<compile_context>
chip_gen: v7x
topology: tpu7x:2x2x1
jax: 0.10.0
libtpu: 0.0.40
codegen_flags: <defaults>
</compile_context>

<pallas_src>
import functools
import math

import jax
import jax.numpy as jnp
from jax.experimental import pallas as pl
from jax.experimental.pallas import tpu as pltpu

BN_EPS = 1e-5
LANE = 128
SUBLANE = 8


def _round_up(x, m):
    return (x + m - 1) // m * m


@functools.lru_cache(maxsize=None)
def _vmem_capacity_bytes():
    # Queried lazily (first trace), never at import time.
    try:
        return int(pltpu.get_tpu_info().vmem_capacity_bytes)
    except Exception:
        return 64 * 1024 * 1024            # conservative (v7x per-TC)


def _vmem_limit_bytes():
    return min((_vmem_capacity_bytes() * 3) // 4, 100 * 1024 * 1024)


def _phase1_tiles(m, k_pad, n_pad, y_bytes=2):
    """Pick (tm, tk, tn) for the matmul+stats kernel from the VMEM budget."""
    budget = int(0.60 * _vmem_capacity_bytes())
    # 256-wide output tiles fill the 256-wide MXUs (v6e/v7x); 128 otherwise.
    tn = 256 if n_pad % 256 == 0 else LANE

    # Collapse the whole contraction into one K step whenever the
    # double-buffered weight panel plus a modest A tile fit comfortably.
    if 2 * k_pad * tn * 2 + 2 * 256 * k_pad * 2 <= budget // 2:
        tk = k_pad
    else:
        tk = LANE
        for cand in (1024, 512, 256):
            if k_pad % cand == 0:
                tk = cand
                break

    def fits(tm):
        a = 2 * tm * tk * 2                       # A panel, bf16, double-buffered
        w = 2 * tk * tn * 2                       # W panel, bf16, double-buffered
        y = 2 * tm * tn * y_bytes                 # y output, double-buffered
        st = 2 * 8 * tn * 4                       # stats output
        acc = 0 if tk == k_pad else tm * tn * 4   # f32 accumulator scratch
        return a + w + y + st + acc <= budget

    tm = min(_round_up(m, SUBLANE), 2048)
    while tm > SUBLANE and not fits(tm):
        tm = max(SUBLANE, _round_up(tm // 2, SUBLANE))
    return tm, tk, tn


# ------------------------- phase 1: matmul + BN stats -------------------------

def _mm_stats_kernel(a_ref, w_ref, y_ref, st_ref, *scratch, k_tiles):
    """(tm,tk) @ (tk,tn) on the MXU (f32 acc).  Emits the un-normalised product
    y (bf16) plus its per-tile column sum / sum-of-squares for BatchNorm."""

    def finalize(y):
        y_ref[...] = y.astype(y_ref.dtype)
        s = jnp.sum(y, axis=0, keepdims=True)            # (1, tn)
        ss = jnp.sum(y * y, axis=0, keepdims=True)       # (1, tn)
        pad = jnp.zeros((6,) + s.shape[1:], jnp.float32)
        st_ref[...] = jnp.concatenate([s, ss, pad], axis=0)[None]

    if k_tiles == 1:
        # K collapsed: no accumulator scratch, no init, no per-step RMW.
        finalize(jnp.dot(a_ref[...], w_ref[...],
                         preferred_element_type=jnp.float32))
    else:
        acc_ref, = scratch
        k = pl.program_id(2)

        @pl.when(k == 0)
        def _():
            acc_ref[...] = jnp.zeros_like(acc_ref)

        acc_ref[...] += jnp.dot(a_ref[...], w_ref[...],
                                preferred_element_type=jnp.float32)

        @pl.when(k == k_tiles - 1)
        def _():
            finalize(acc_ref[...])


@functools.lru_cache(maxsize=None)
def _mm_stats_call(m_pad, k_pad, n_pad, tm, tk, tn):
    m_tiles, n_tiles, k_tiles = m_pad // tm, n_pad // tn, k_pad // tk
    kern = functools.partial(_mm_stats_kernel, k_tiles=k_tiles)
    grid_spec = pltpu.PrefetchScalarGridSpec(
        num_scalar_prefetch=0,
        grid=(m_tiles, n_tiles, k_tiles),                 # reduction (K) last
        in_specs=[
            pl.BlockSpec((tm, tk), lambda mi, j, k: (mi, k)),   # im2col patches
            pl.BlockSpec((tk, tn), lambda mi, j, k: (k, j)),    # weights
        ],
        out_specs=[
            pl.BlockSpec((tm, tn), lambda mi, j, k: (mi, j)),       # y
            pl.BlockSpec((1, 8, tn), lambda mi, j, k: (mi, 0, j)),  # stats
        ],
        scratch_shapes=([] if k_tiles == 1
                        else [pltpu.VMEM((tm, tn), jnp.float32)]),
    )
    return pl.pallas_call(
        kern,
        out_shape=(jax.ShapeDtypeStruct((m_pad, n_pad), jnp.bfloat16),
                   jax.ShapeDtypeStruct((m_tiles, 8, n_pad), jnp.float32)),
        grid_spec=grid_spec,
        compiler_params=pltpu.CompilerParams(
            dimension_semantics=("parallel", "parallel", "arbitrary"),
            vmem_limit_bytes=_vmem_limit_bytes(),
        ),
    )


# --------------- phase 2: normalize + affine (+ identity) (+ ReLU) ------------

def _bn_apply_kernel(y_ref, sc_ref, sh_ref, *rest, add_identity, relu):
    if add_identity:
        id_ref, o_ref = rest
    else:
        o_ref, = rest
    y = y_ref[...].astype(jnp.float32) * sc_ref[...] + sh_ref[...]
    if add_identity:
        y = y + id_ref[...].astype(jnp.float32)
    if relu:
        y = jnp.maximum(y, 0.0)
    o_ref[...] = y.astype(o_ref.dtype)


@functools.lru_cache(maxsize=None)
def _bn_apply_call(m_pad, n_pad, tm, tn, add_identity, relu, out_dtype_name):
    out_dtype = jnp.dtype(out_dtype_name)
    m_tiles, n_tiles = m_pad // tm, n_pad // tn
    kern = functools.partial(_bn_apply_kernel,
                             add_identity=add_identity, relu=relu)
    in_specs = [
        pl.BlockSpec((tm, tn), lambda mi, j: (mi, j)),    # un-normalised y
        pl.BlockSpec((1, tn), lambda mi, j: (0, j)),      # scale
        pl.BlockSpec((1, tn), lambda mi, j: (0, j)),      # shift
    ]
    if add_identity:
        in_specs.append(pl.BlockSpec((tm, tn), lambda mi, j: (mi, j)))
    grid_spec = pltpu.PrefetchScalarGridSpec(
        num_scalar_prefetch=0,
        grid=(m_tiles, n_tiles),
        in_specs=in_specs,
        out_specs=pl.BlockSpec((tm, tn), lambda mi, j: (mi, j)),
    )
    return pl.pallas_call(
        kern,
        out_shape=jax.ShapeDtypeStruct((m_pad, n_pad), out_dtype),
        grid_spec=grid_spec,
        compiler_params=pltpu.CompilerParams(
            dimension_semantics=("parallel", "parallel"),
            vmem_limit_bytes=_vmem_limit_bytes(),
        ),
    )


# ------------------------------- layer helper ---------------------------------

def conv_bn(x_nhwc, w, gamma, beta, *, stride, pad, relu,
            identity=None, out_dtype=jnp.bfloat16):
    """Conv2d(bias=False) + BatchNorm2d (training-mode batch stats)
    [+ residual add] [+ ReLU]."""
    x = x_nhwc.astype(jnp.bfloat16)        # cast BEFORE the 9x im2col expansion
    B, H, W, Cin = x.shape
    kh, kw, _, Cout = w.shape
    xp = jnp.pad(x, ((0, 0), (pad, pad), (pad, pad), (0, 0)))
    Hp, Wp = H + 2 * pad, W + 2 * pad
    oh = (Hp - kh) // stride + 1
    ow = (Wp - kw) // stride + 1

    # TODO(synk): im2col is still materialised in JAX; moving it into the kernel
    # (9 shifted matmuls over an extra (kh,kw) grid axis) would remove the ~9x
    # HBM read amplification for large feature maps.
    cols = []
    for i in range(kh):
        for j in range(kw):
            cols.append(xp[:, i:i + stride * oh:stride,
                           j:j + stride * ow:stride, :])
    patches = jnp.concatenate(cols, axis=-1).reshape(B * oh * ow, kh * kw * Cin)
    wmat = w.reshape(kh * kw * Cin, Cout).astype(jnp.bfloat16)

    M, K = patches.shape
    K_pad = _round_up(K, LANE)
    N_pad = _round_up(Cout, LANE)
    tm, tk, tn = _phase1_tiles(M, K_pad, N_pad)
    M_pad = _round_up(M, tm)

    # Zero padding keeps both the matmul and the BN sums exact
    # (stats are divided by the true M below).
    patches = jnp.pad(patches, ((0, M_pad - M), (0, K_pad - K)))
    wmat = jnp.pad(wmat, ((0, K_pad - K), (0, N_pad - Cout)))

    y, stats = _mm_stats_call(M_pad, K_pad, N_pad, tm, tk, tn)(patches, wmat)

    # Tiny (Cout,)-sized fold-up: batch mean / biased var -> scale & shift.
    # (One-pass E[x^2]-E[x]^2 in f32; fine for normalised activations.)
    inv_m = 1.0 / float(M)
    mean = jnp.sum(stats[:, 0, :], axis=0) * inv_m
    var = jnp.maximum(jnp.sum(stats[:, 1, :], axis=0) * inv_m - mean * mean, 0.0)
    inv_std = jax.lax.rsqrt(var + BN_EPS)
    g = jnp.pad(gamma.astype(jnp.float32), (0, N_pad - Cout))
    b = jnp.pad(beta.astype(jnp.float32), (0, N_pad - Cout))
    scale = (g * inv_std).reshape(1, N_pad)
    shift = (b - mean * g * inv_std).reshape(1, N_pad)

    args = [y, scale, shift]
    add_identity = identity is not None
    if add_identity:
        idm = identity.astype(jnp.bfloat16).reshape(B * oh * ow, Cout)
        idm = jnp.pad(idm, ((0, M_pad - M), (0, N_pad - Cout)))
        args.append(idm)

    out = _bn_apply_call(M_pad, N_pad, tm, tn, add_identity, relu,
                         jnp.dtype(out_dtype).name)(*args)
    return out[:M, :Cout].reshape(B, oh, ow, Cout)


# -------------------------------- BasicBlock ----------------------------------

def basic_block_forward(params, x_nchw, *, stride=1, has_downsample=False):
    """Matches BasicBlock.forward (training-mode BatchNorm; running stats are
    not updated)."""
    # NCHW -> NHWC, cast to bf16 once (before any im2col expansion).
    x = jnp.transpose(x_nchw, (0, 2, 3, 1)).astype(jnp.bfloat16)

    if has_downsample:
        # TODO(synk): only the canonical conv1x1 + BN downsample is supported.
        identity = conv_bn(x, params["ds_w"], params["ds_g"], params["ds_b"],
                           stride=stride, pad=0, relu=False,
                           out_dtype=jnp.bfloat16)
    else:
        identity = x

    out = conv_bn(x, params["w1"], params["g1"], params["b1"],
                  stride=stride, pad=1, relu=True, out_dtype=jnp.bfloat16)
    # conv2 + bn2 + residual add + final ReLU (add/ReLU fused in phase-2 kernel)
    out = conv_bn(out, params["w2"], params["g2"], params["b2"],
                  stride=1, pad=1, relu=True, identity=identity,
                  out_dtype=jnp.float32)

    return jnp.transpose(out, (0, 3, 1, 2))   # back to NCHW


forward = jax.jit(basic_block_forward, static_argnames=("stride", "has_downsample"))


# ---------------------------- plain-JAX reference -----------------------------

def _ref_conv_bn(x, w, g, b, *, stride, pad, relu, identity=None):
    y = jax.lax.conv_general_dilated(
        x, w, window_strides=(stride, stride),
        padding=((pad, pad), (pad, pad)),
        dimension_numbers=("NHWC", "HWIO", "NHWC"))
    mean = jnp.mean(y, axis=(0, 1, 2))
    var = jnp.mean(jnp.square(y - mean), axis=(0, 1, 2))
    y = (y - mean) * jax.lax.rsqrt(var + BN_EPS) * g + b
    if identity is not None:
        y = y + identity
    if relu:
        y = jnp.maximum(y, 0.0)
    return y


def basic_block_reference(params, x_nchw, *, stride=1, has_downsample=False):
    x = jnp.transpose(x_nchw, (0, 2, 3, 1)).astype(jnp.float32)
    if has_downsample:
        identity = _ref_conv_bn(x, params["ds_w"], params["ds_g"],
                                params["ds_b"], stride=stride, pad=0, relu=False)
    else:
        identity = x
    out = _ref_conv_bn(x, params["w1"], params["g1"], params["b1"],
                       stride=stride, pad=1, relu=True)
    out = _ref_conv_bn(out, params["w2"], params["g2"], params["b2"],
                       stride=1, pad=1, relu=True, identity=identity)
    return jnp.transpose(out, (0, 3, 1, 2))


# --------------------------------- parameters ---------------------------------

def init_params(key, inplanes, planes, stride=1):
    has_ds = (stride != 1) or (inplanes != planes)
    k1, k2, k3 = jax.random.split(key, 3)

    def conv_w(k, cin, cout, ksz):
        std = math.sqrt(2.0 / (cout * ksz * ksz))
        return jax.random.normal(k, (ksz, ksz, cin, cout), jnp.float32) * std

    p = {
        "w1": conv_w(k1, inplanes, planes, 3),
        "g1": jnp.ones((planes,), jnp.float32),
        "b1": jnp.zeros((planes,), jnp.float32),
        "w2": conv_w(k2, planes, planes, 3),
        "g2": jnp.ones((planes,), jnp.float32),
        "b2": jnp.zeros((planes,), jnp.float32),
    }
    if has_ds:
        p["ds_w"] = conv_w(k3, inplanes, planes, 1)
        p["ds_g"] = jnp.ones((planes,), jnp.float32)
        p["ds_b"] = jnp.zeros((planes,), jnp.float32)
    return p, has_ds


# ------------------------------------ main -------------------------------------

if __name__ == "__main__":
    key = jax.random.PRNGKey(0)
    kp, kx = jax.random.split(key)

    # BasicBlock(inplanes=32, planes=32, stride=1, downsample=None)
    B, Cin, H, W = 2, 32, 16, 16
    planes, stride = 32, 1

    params, has_ds = init_params(kp, Cin, planes, stride)
    x = jax.random.normal(kx, (B, Cin, H, W), jnp.float32)

    out = forward(params, x, stride=stride, has_downsample=has_ds)
    out = jax.block_until_ready(out)

    assert out.shape == (B, planes, H // stride, W // stride), out.shape
    assert bool(jnp.all(jnp.isfinite(out)))
    assert bool(jnp.all(out >= 0.0))          # final ReLU

    ref = jax.jit(basic_block_reference,
                  static_argnames=("stride", "has_downsample"))(
        params, x, stride=stride, has_downsample=has_ds)
    err = float(jnp.max(jnp.abs(out - ref)))
    assert err < 2e-1, f"max abs err vs reference = {err}"

    print("KERNEL_OK")
</pallas_src>

<mosaic_0001>
module attributes {stable_mosaic.version = 11 : i64} {
  func.func @_mm_stats_kernel(%arg0: i32, %arg1: i32, %arg2: i32, %arg3: memref<512x384xbf16, #tpu.memory_space<vmem>>, %arg4: memref<384x128xbf16, #tpu.memory_space<vmem>>, %arg5: memref<512x128xbf16, #tpu.memory_space<vmem>>, %arg6: memref<1x8x128xf32, #tpu.memory_space<vmem>>) attributes {dimension_semantics = [#tpu.dimension_semantics<parallel>, #tpu.dimension_semantics<parallel>, #tpu.dimension_semantics<arbitrary>], iteration_bounds = array<i64: 1, 1, 1>, scalar_prefetch = 0 : i64, scratch_operands = 0 : i64, tpu.core_type = #tpu.core_type<tc>, window_params = [{transform_indices = @transform_0, window_bounds = array<i64: 512, 384>}, {transform_indices = @transform_1, window_bounds = array<i64: 384, 128>}, {transform_indices = @transform_2, window_bounds = array<i64: 512, 128>}, {transform_indices = @transform_3, window_bounds = array<i64: 1, 8, 128>}]} {
    %c0 = arith.constant 0 : index
    %c0_0 = arith.constant 0 : index
    %0 = vector.load %arg3[%c0, %c0_0] : memref<512x384xbf16, #tpu.memory_space<vmem>>, vector<512x384xbf16>
    %c0_1 = arith.constant 0 : index
    %c0_2 = arith.constant 0 : index
    %1 = vector.load %arg4[%c0_1, %c0_2] : memref<384x128xbf16, #tpu.memory_space<vmem>>, vector<384x128xbf16>
    %cst = arith.constant dense<0.000000e+00> : vector<512x128xf32>
    %2 = tpu.matmul %0, %1, %cst {dimension_numbers = #tpu.dot_dimension_numbers<[1], [0], [0], [1], [0, 0, 1, 1], [], []>} : vector<512x384xbf16>, vector<384x128xbf16>, vector<512x128xf32> -> vector<512x128xf32>
    %3 = arith.truncf %2 : vector<512x128xf32> to vector<512x128xbf16>
    %c0_3 = arith.constant 0 : index
    %c0_4 = arith.constant 0 : index
    %4 = vector.load %arg5[%c0_3, %c0_4] : memref<512x128xbf16, #tpu.memory_space<vmem>>, vector<512x128xbf16>
    tpu.vector_store %arg5[%c0_3, %c0_4], %3 {strides = array<i32>} : memref<512x128xbf16, #tpu.memory_space<vmem>>, vector<512x128xbf16>,
    %cst_5 = arith.constant dense<0.000000e+00> : vector<128xf32>
    %5 = vector.multi_reduction <add>, %2, %cst_5 [0] : vector<512x128xf32> to vector<128xf32>
    %6 = vector.shape_cast %5 : vector<128xf32> to vector<1x128xf32>
    %7 = arith.mulf %2, %2 : vector<512x128xf32>
    %cst_6 = arith.constant dense<0.000000e+00> : vector<128xf32>
    %8 = vector.multi_reduction <add>, %7, %cst_6 [0] : vector<512x128xf32> to vector<128xf32>
    %9 = vector.shape_cast %8 : vector<128xf32> to vector<1x128xf32>
    %cst_7 = arith.constant 0.000000e+00 : f32
    %10 = vector.broadcast %cst_7 : f32 to vector<6x128xf32>
    %11 = tpu.concatenate %6, %9, %10 in 0 : vector<1x128xf32>, vector<1x128xf32>, vector<6x128xf32> -> vector<8x128xf32>
    %12 = vector.shape_cast %11 : vector<8x128xf32> to vector<1x8x128xf32>
    %c0_8 = arith.constant 0 : index
    %c0_9 = arith.constant 0 : index
    %c0_10 = arith.constant 0 : index
    %13 = vector.load %arg6[%c0_8, %c0_9, %c0_10] : memref<1x8x128xf32, #tpu.memory_space<vmem>>, vector<1x8x128xf32>
    tpu.vector_store %arg6[%c0_8, %c0_9, %c0_10], %12 {strides = array<i32>} : memref<1x8x128xf32, #tpu.memory_space<vmem>>, vector<1x8x128xf32>,
    return
  }
  func.func @transform_0(%arg0: i32, %arg1: i32, %arg2: i32) -> (i32, i32) {
    %c0_i32 = arith.constant 0 : i32
    return %arg0, %arg2 : i32, i32
  }
  func.func @transform_1(%arg0: i32, %arg1: i32, %arg2: i32) -> (i32, i32) {
    %c0_i32 = arith.constant 0 : i32
    return %arg2, %arg1 : i32, i32
  }
  func.func @transform_2(%arg0: i32, %arg1: i32, %arg2: i32) -> (i32, i32) {
    %c0_i32 = arith.constant 0 : i32
    return %arg0, %arg1 : i32, i32
  }
  func.func @transform_3(%arg0: i32, %arg1: i32, %arg2: i32) -> (i32, i32, i32) {
    %c0_i32 = arith.constant 0 : i32
    %c0_i32_0 = arith.constant 0 : i32
    return %arg0, %c0_i32, %arg1 : i32, i32, i32
  }
}

module attributes {stable_mosaic.version = 11 : i64} {
  func.func @_bn_apply_kernel(%arg0: i32, %arg1: i32, %arg2: memref<512x128xbf16, #tpu.memory_space<vmem>>, %arg3: memref<1x128xf32, #tpu.memory_space<vmem>>, %arg4: memref<1x128xf32, #tpu.memory_space<vmem>>, %arg5: memref<512x128xbf16, #tpu.memory_space<vmem>>) attributes {dimension_semantics = [#tpu.dimension_semantics<parallel>, #tpu.dimension_semantics<parallel>], iteration_bounds = array<i64: 1, 1>, scalar_prefetch = 0 : i64, scratch_operands = 0 : i64, tpu.core_type = #tpu.core_type<tc>, window_params = [{transform_indices = @transform_0, window_bounds = array<i64: 512, 128>}, {transform_indices = @transform_1, window_bounds = array<i64: 1, 128>}, {transform_indices = @transform_2, window_bounds = array<i64: 1, 128>}, {transform_indices = @transform_3, window_bounds = array<i64: 512, 128>}]} {
    %c0 = arith.constant 0 : index
    %c0_0 = arith.constant 0 : index
    %0 = vector.load %arg2[%c0, %c0_0] : memref<512x128xbf16, #tpu.memory_space<vmem>>, vector<512x128xbf16>
    %1 = arith.extf %0 : vector<512x128xbf16> to vector<512x128xf32>
    %c0_1 = arith.constant 0 : index
    %c0_2 = arith.constant 0 : index
    %2 = vector.load %arg3[%c0_1, %c0_2] : memref<1x128xf32, #tpu.memory_space<vmem>>, vector<1x128xf32>
    %3 = vector.broadcast %2 : vector<1x128xf32> to vector<512x128xf32>
    %4 = arith.mulf %1, %3 : vector<512x128xf32>
    %c0_3 = arith.constant 0 : index
    %c0_4 = arith.constant 0 : index
    %5 = vector.load %arg4[%c0_3, %c0_4] : memref<1x128xf32, #tpu.memory_space<vmem>>, vector<1x128xf32>
    %6 = vector.broadcast %5 : vector<1x128xf32> to vector<512x128xf32>
    %7 = arith.addf %4, %6 : vector<512x128xf32>
    %cst = arith.constant 0.000000e+00 : f32
    %8 = vector.broadcast %cst : f32 to vector<512x128xf32>
    %9 = arith.maximumf %7, %8 : vector<512x128xf32>
    %10 = arith.truncf %9 : vector<512x128xf32> to vector<512x128xbf16>
    %c0_5 = arith.constant 0 : index
    %c0_6 = arith.constant 0 : index
    %11 = vector.load %arg5[%c0_5, %c0_6] : memref<512x128xbf16, #tpu.memory_space<vmem>>, vector<512x128xbf16>
    tpu.vector_store %arg5[%c0_5, %c0_6], %10 {strides = array<i32>} : memref<512x128xbf16, #tpu.memory_space<vmem>>, vector<512x128xbf16>,
    return
  }
  func.func @transform_0(%arg0: i32, %arg1: i32) -> (i32, i32) {
    %c0_i32 = arith.constant 0 : i32
    return %arg0, %arg1 : i32, i32
  }
  func.func @transform_1(%arg0: i32, %arg1: i32) -> (i32, i32) {
    %c0_i32 = arith.constant 0 : i32
    %c0_i32_0 = arith.constant 0 : i32
    return %c0_i32, %arg1 : i32, i32
  }
  func.func @transform_2(%arg0: i32, %arg1: i32) -> (i32, i32) {
    %c0_i32 = arith.constant 0 : i32
    %c0_i32_0 = arith.constant 0 : i32
    return %c0_i32, %arg1 : i32, i32
  }
  func.func @transform_3(%arg0: i32, %arg1: i32) -> (i32, i32) {
    %c0_i32 = arith.constant 0 : i32
    return %arg0, %arg1 : i32, i32
  }
}

module attributes {stable_mosaic.version = 11 : i64} {
  func.func @_bn_apply_kernel(%arg0: i32, %arg1: i32, %arg2: memref<512x128xbf16, #tpu.memory_space<vmem>>, %arg3: memref<1x128xf32, #tpu.memory_space<vmem>>, %arg4: memref<1x128xf32, #tpu.memory_space<vmem>>, %arg5: memref<512x128xbf16, #tpu.memory_space<vmem>>, %arg6: memref<512x128xf32, #tpu.memory_space<vmem>>) attributes {dimension_semantics = [#tpu.dimension_semantics<parallel>, #tpu.dimension_semantics<parallel>], iteration_bounds = array<i64: 1, 1>, scalar_prefetch = 0 : i64, scratch_operands = 0 : i64, tpu.core_type = #tpu.core_type<tc>, window_params = [{transform_indices = @transform_0, window_bounds = array<i64: 512, 128>}, {transform_indices = @transform_1, window_bounds = array<i64: 1, 128>}, {transform_indices = @transform_2, window_bounds = array<i64: 1, 128>}, {transform_indices = @transform_3, window_bounds = array<i64: 512, 128>}, {transform_indices = @transform_4, window_bounds = array<i64: 512, 128>}]} {
    %c0 = arith.constant 0 : index
    %c0_0 = arith.constant 0 : index
    %0 = vector.load %arg2[%c0, %c0_0] : memref<512x128xbf16, #tpu.memory_space<vmem>>, vector<512x128xbf16>
    %1 = arith.extf %0 : vector<512x128xbf16> to vector<512x128xf32>
    %c0_1 = arith.constant 0 : index
    %c0_2 = arith.constant 0 : index
    %2 = vector.load %arg3[%c0_1, %c0_2] : memref<1x128xf32, #tpu.memory_space<vmem>>, vector<1x128xf32>
    %3 = vector.broadcast %2 : vector<1x128xf32> to vector<512x128xf32>
    %4 = arith.mulf %1, %3 : vector<512x128xf32>
    %c0_3 = arith.constant 0 : index
    %c0_4 = arith.constant 0 : index
    %5 = vector.load %arg4[%c0_3, %c0_4] : memref<1x128xf32, #tpu.memory_space<vmem>>, vector<1x128xf32>
    %6 = vector.broadcast %5 : vector<1x128xf32> to vector<512x128xf32>
    %7 = arith.addf %4, %6 : vector<512x128xf32>
    %c0_5 = arith.constant 0 : index
    %c0_6 = arith.constant 0 : index
    %8 = vector.load %arg5[%c0_5, %c0_6] : memref<512x128xbf16, #tpu.memory_space<vmem>>, vector<512x128xbf16>
    %9 = arith.extf %8 : vector<512x128xbf16> to vector<512x128xf32>
    %10 = arith.addf %7, %9 : vector<512x128xf32>
    %cst = arith.constant 0.000000e+00 : f32
    %11 = vector.broadcast %cst : f32 to vector<512x128xf32>
    %12 = arith.maximumf %10, %11 : vector<512x128xf32>
    %c0_7 = arith.constant 0 : index
    %c0_8 = arith.constant 0 : index
    %13 = vector.load %arg6[%c0_7, %c0_8] : memref<512x128xf32, #tpu.memory_space<vmem>>, vector<512x128xf32>
    tpu.vector_store %arg6[%c0_7, %c0_8], %12 {strides = array<i32>} : memref<512x128xf32, #tpu.memory_space<vmem>>, vector<512x128xf32>,
    return
  }
  func.func @transform_0(%arg0: i32, %arg1: i32) -> (i32, i32) {
    %c0_i32 = arith.constant 0 : i32
    return %arg0, %arg1 : i32, i32
  }
  func.func @transform_1(%arg0: i32, %arg1: i32) -> (i32, i32) {
    %c0_i32 = arith.constant 0 : i32
    %c0_i32_0 = arith.constant 0 : i32
    return %c0_i32, %arg1 : i32, i32
  }
  func.func @transform_2(%arg0: i32, %arg1: i32) -> (i32, i32) {
    %c0_i32 = arith.constant 0 : i32
    %c0_i32_0 = arith.constant 0 : i32
    return %c0_i32, %arg1 : i32, i32
  }
  func.func @transform_3(%arg0: i32, %arg1: i32) -> (i32, i32) {
    %c0_i32 = arith.constant 0 : i32
    return %arg0, %arg1 : i32, i32
  }
  func.func @transform_4(%arg0: i32, %arg1: i32) -> (i32, i32) {
    %c0_i32 = arith.constant 0 : i32
    return %arg0, %arg1 : i32, i32
  }
}

</mosaic_0001>

<bundles_post_ra>
// kernel: basic_block_forward.5
= control target key start
LH: loop header
LB: loop body
LE: loop exit
PB: predicated region body
PF: predicated region fallthrough
CT: control target
= control target key end

     0   :  { %s1502_s0 = inlined_call_operand.vmem [shape: bf16[512,128], index: 0, kind: input, shape index: {}]   ;;  %s1503_s1 = inlined_call_operand.vmem [shape: f32[1,128], index: 1, kind: input, shape index: {}]   ;;  %s1504_s2 = inlined_call_operand.vmem [shape: f32[1,128], index: 2, kind: input, shape index: {}]   ;;  %s1505_s3 = inlined_call_operand.vmem [shape: bf16[512,128], index: 3, kind: output, shape index: {}]  }
   0x1   :  { %v803_v0 = vld [vmem:[%s1502_s0] sm:$0xff]   ;;  %v1090_v4 = vld [vmem:[%s1502_s0 + $0x8] sm:$0xff]   ;;  %v1091_v5 = vld [vmem:[%s1502_s0 + $0x10] sm:$0xff]  }
   0x2   :  { %v1178_v1 = vld [vmem:[%s1503_s1] ss:$0 sm:$0xff]  ;;  %v804_v2 = vunpack.c.l.bf16 %v803_v0  ;;  %v805_v3 = vunpack.c.h.bf16 %v803_v0  ;;  %v1092_v6 = vld [vmem:[%s1502_s0 + $0x18] sm:$0xff]   ;;  %v808_v8 = vunpack.c.l.bf16 %v1090_v4  ;;  %v809_v9 = vunpack.c.h.bf16 %v1090_v4  ;;  %v1094_v33 = vld [vmem:[%s1502_s0 + $0x28] sm:$0xff]  }
   0x3   :  { %v1192_v7 = vld [vmem:[%s1504_s2] ss:$0 sm:$0xff]  ;;  %v812_v10 = vunpack.c.l.bf16 %v1091_v5  ;;  %v813_v11 = vunpack.c.h.bf16 %v1091_v5  ;;  %v816_v14 = vunpack.c.l.bf16 %v1092_v6  ;;  %v817_v15 = vunpack.c.h.bf16 %v1092_v6  ;;  %v1095_v38 = vld [vmem:[%s1502_s0 + $0x30] sm:$0xff]   ;;  %v1096_v43 = vld [vmem:[%s1502_s0 + $0x38] sm:$0xff]  }
   0x4   :  { %v149_v12 = vmul.f32 %v804_v2, %v1178_v1  ;;  %v150_v13 = vmul.f32 %v805_v3, %v1178_v1  ;;  %v151_v16 = vmul.f32 %v808_v8, %v1178_v1  ;;  %v152_v17 = vmul.f32 %v809_v9, %v1178_v1  ;;  %v1093_v28 = vld [vmem:[%s1502_s0 + $0x20] sm:$0xff]  }
   0x5   :  { %v153_v18 = vmul.f32 %v812_v10, %v1178_v1  ;;  %v154_v19 = vmul.f32 %v813_v11, %v1178_v1  ;;  %v155_v22 = vmul.f32 %v816_v14, %v1178_v1  ;;  %v156_v23 = vmul.f32 %v817_v15, %v1178_v1  ;;  %v1097_v0 = vld [vmem:[%s1502_s0 + $0x40] sm:$0xff]   ;;  %v1098_v11 = vld [vmem:[%s1502_s0 + $0x48] sm:$0xff]  }
   0x6   :  { %v220_v20 = vadd.f32 %v1192_v7, %v149_v12  ;;  %v221_v21 = vadd.f32 %v1192_v7, %v150_v13  ;;  %v222_v24 = vadd.f32 %v1192_v7, %v151_v16  ;;  %v223_v25 = vadd.f32 %v1192_v7, %v152_v17  ;;  %v1099_v16 = vld [vmem:[%s1502_s0 + $0x50] sm:$0xff]  }
   0x7   :  { %v224_v26 = vadd.f32 %v1192_v7, %v153_v18  ;;  %v225_v27 = vadd.f32 %v1192_v7, %v154_v19  ;;  %v226_v31 = vadd.f32 %v1192_v7, %v155_v22  ;;  %v227_v32 = vadd.f32 %v1192_v7, %v156_v23 }
   0x8   :  { %v284_v29 = vmax.f32 %v220_v20, 0.0  ;;  %v285_v30 = vmax.f32 %v221_v21, 0.0  ;;  %v286_v34 = vmax.f32 %v222_v24, 0.0  ;;  %v287_v35 = vmax.f32 %v223_v25, 0.0  ;;  %v1100_v25 = vld [vmem:[%s1502_s0 + $0x58] sm:$0xff]  }
   0x9   :  { %v288_v36 = vmax.f32 %v224_v26, 0.0  ;;  %v289_v37 = vmax.f32 %v225_v27, 0.0  ;;  %v290_v40 = vmax.f32 %v226_v31, 0.0  ;;  %v291_v41 = vmax.f32 %v227_v32, 0.0 }
   0xa   :  { %v933_v39 = vpack.c.bf16 %v285_v30, %v284_v29  ;;  %v820_v42 = vunpack.c.l.bf16 %v1093_v28  ;;  %v938_v44 = vpack.c.bf16 %v287_v35, %v286_v34  ;;  %v821_v46 = vunpack.c.h.bf16 %v1093_v28 }
   0xb   :  { %v943_v45 = vpack.c.bf16 %v289_v37, %v288_v36  ;;  %v824_v47 = vunpack.c.l.bf16 %v1094_v33  ;;  %v948_v48 = vpack.c.bf16 %v291_v41, %v290_v40  ;;  %v825_v50 = vunpack.c.h.bf16 %v1094_v33 }
   0xc   :  { %934 = vst [vmem:[%s1505_s3] sm:$0xff] %v933_v39   ;;  %v157_v49 = vmul.f32 %v820_v42, %v1178_v1  ;;  %v828_v51 = vunpack.c.l.bf16 %v1095_v38  ;;  %1121 = vst [vmem:[%s1505_s3 + $0x8] sm:$0xff] %v938_v44   ;;  %v158_v52 = vmul.f32 %v821_v46, %v1178_v1  ;;  %v829_v54 = vunpack.c.h.bf16 %v1095_v38  ;;  %v1101_v38 = vld [vmem:[%s1502_s0 + $0x60] sm:$0xff]  }
   0xd   :  { %1122 = vst [vmem:[%s1505_s3 + $0x10] sm:$0xff] %v943_v45   ;;  %v159_v53 = vmul.f32 %v824_v47, %v1178_v1  ;;  %v832_v55 = vunpack.c.l.bf16 %v1096_v43  ;;  %1123 = vst [vmem:[%s1505_s3 + $0x18] sm:$0xff] %v948_v48   ;;  %v160_v57 = vmul.f32 %v825_v50, %v1178_v1  ;;  %v833_v59 = vunpack.c.h.bf16 %v1096_v43 }
   0xe   :  { %v228_v56 = vadd.f32 %v1192_v7, %v157_v49  ;;  %v161_v58 = vmul.f32 %v828_v51, %v1178_v1  ;;  %v229_v60 = vadd.f32 %v1192_v7, %v158_v52  ;;  %v162_v62 = vmul.f32 %v829_v54, %v1178_v1  ;;  %v1102_v51 = vld [vmem:[%s1502_s0 + $0x68] sm:$0xff]  }
   0xf   :  { %v230_v61 = vadd.f32 %v1192_v7, %v159_v53  ;;  %v163_v63 = vmul.f32 %v832_v55, %v1178_v1  ;;  %v231_v3 = vadd.f32 %v1192_v7, %v160_v57  ;;  %v164_v5 = vmul.f32 %v833_v59, %v1178_v1 }
  0x10   :  { %v292_v2 = vmax.f32 %v228_v56, 0.0  ;;  %v232_v4 = vadd.f32 %v1192_v7, %v161_v58  ;;  %v293_v6 = vmax.f32 %v229_v60, 0.0  ;;  %v233_v9 = vadd.f32 %v1192_v7, %v162_v62  ;;  %v1103_v60 = vld [vmem:[%s1502_s0 + $0x70] sm:$0xff]  }
  0x11   :  { %v294_v8 = vmax.f32 %v230_v61, 0.0  ;;  %v234_v10 = vadd.f32 %v1192_v7, %v163_v63  ;;  %v295_v12 = vmax.f32 %v231_v3, 0.0  ;;  %v235_v14 = vadd.f32 %v1192_v7, %v164_v5 }
  0x12   :  { %v296_v13 = vmax.f32 %v232_v4, 0.0  ;;  %v836_v15 = vunpack.c.l.bf16 %v1097_v0  ;;  %v953_v17 = vpack.c.bf16 %v293_v6, %v292_v2  ;;  %v297_v18 = vmax.f32 %v233_v9, 0.0  ;;  %v1104_v2 = vld [vmem:[%s1502_s0 + $0x78] sm:$0xff]  }
  0x13   :  { %v298_v19 = vmax.f32 %v234_v10, 0.0  ;;  %v837_v20 = vunpack.c.h.bf16 %v1097_v0  ;;  %v958_v21 = vpack.c.bf16 %v295_v12, %v294_v8  ;;  %v299_v22 = vmax.f32 %v235_v14, 0.0  ;;  %v1105_v12 = vld [vmem:[%s1502_s0 + $0x80] sm:$0xff]  }
  0x14   :  { %v165_v23 = vmul.f32 %v836_v15, %v1178_v1  ;;  %v840_v24 = vunpack.c.l.bf16 %v1098_v11  ;;  %1124 = vst [vmem:[%s1505_s3 + $0x20] sm:$0xff] %v953_v17   ;;  %v963_v26 = vpack.c.bf16 %v297_v18, %v296_v13  ;;  %v841_v28 = vunpack.c.h.bf16 %v1098_v11 }
  0x15   :  { %v166_v27 = vmul.f32 %v837_v20, %v1178_v1  ;;  %v844_v29 = vunpack.c.l.bf16 %v1099_v16  ;;  %1125 = vst [vmem:[%s1505_s3 + $0x28] sm:$0xff] %v958_v21   ;;  %v968_v30 = vpack.c.bf16 %v299_v22, %v298_v19  ;;  %v845_v33 = vunpack.c.h.bf16 %v1099_v16 }
  0x16   :  { %v236_v31 = vadd.f32 %v1192_v7, %v165_v23  ;;  %v167_v32 = vmul.f32 %v840_v24, %v1178_v1  ;;  %1126 = vst [vmem:[%s1505_s3 + $0x30] sm:$0xff] %v963_v26   ;;  %v168_v35 = vmul.f32 %v841_v28, %v1178_v1  ;;  %v848_v37 = vunpack.c.l.bf16 %v1100_v25 }
  0x17   :  { %v237_v34 = vadd.f32 %v1192_v7, %v166_v27  ;;  %v169_v36 = vmul.f32 %v844_v29, %v1178_v1  ;;  %1127 = vst [vmem:[%s1505_s3 + $0x38] sm:$0xff] %v968_v30   ;;  %v170_v41 = vmul.f32 %v845_v33, %v1178_v1  ;;  %v849_v42 = vunpack.c.h.bf16 %v1100_v25  ;;  %v1106_v29 = vld [vmem:[%s1502_s0 + $0x88] sm:$0xff]  }
  0x18   :  { %v300_v39 = vmax.f32 %v236_v31, 0.0  ;;  %v238_v40 = vadd.f32 %v1192_v7, %v167_v32  ;;  %v239_v44 = vadd.f32 %v1192_v7, %v168_v35  ;;  %v171_v46 = vmul.f32 %v848_v37, %v1178_v1 }
  0x19   :  { %v301_v43 = vmax.f32 %v237_v34, 0.0  ;;  %v240_v45 = vadd.f32 %v1192_v7, %v169_v36  ;;  %v241_v48 = vadd.f32 %v1192_v7, %v170_v41  ;;  %v172_v49 = vmul.f32 %v849_v42, %v1178_v1  ;;  %v1107_v34 = vld [vmem:[%s1502_s0 + $0x90] sm:$0xff]  }
  0x1a   :  { %v302_v47 = vmax.f32 %v238_v40, 0.0  ;;  %v852_v50 = vunpack.c.l.bf16 %v1101_v38  ;;  %v303_v53 = vmax.f32 %v239_v44, 0.0  ;;  %v242_v55 = vadd.f32 %v1192_v7, %v171_v46 }
  0x1b   :  { %v973_v52 = vpack.c.bf16 %v301_v43, %v300_v39  ;;  %v304_v54 = vmax.f32 %v240_v45, 0.0  ;;  %v305_v56 = vmax.f32 %v241_v48, 0.0  ;;  %v243_v57 = vadd.f32 %v1192_v7, %v172_v49  ;;  %v1108_v43 = vld [vmem:[%s1502_s0 + $0x98] sm:$0xff]  }
  0x1c   :  { %v853_v58 = vunpack.c.h.bf16 %v1101_v38  ;;  %v173_v59 = vmul.f32 %v852_v50, %v1178_v1  ;;  %v978_v61 = vpack.c.bf16 %v303_v53, %v302_v47  ;;  %v306_v62 = vmax.f32 %v242_v55, 0.0 }
  0x1d   :  { %1128 = vst [vmem:[%s1505_s3 + $0x40] sm:$0xff] %v973_v52   ;;  %v856_v63 = vunpack.c.l.bf16 %v1102_v51  ;;  %v857_v0 = vunpack.c.h.bf16 %v1102_v51  ;;  %v983_v3 = vpack.c.bf16 %v305_v56, %v304_v54  ;;  %v307_v4 = vmax.f32 %v243_v57, 0.0  ;;  %v1109_v56 = vld [vmem:[%s1502_s0 + $0xa0] sm:$0xff]  }
  0x1e   :  { %v174_v5 = vmul.f32 %v853_v58, %v1178_v1  ;;  %v244_v6 = vadd.f32 %v1192_v7, %v173_v59  ;;  %1129 = vst [vmem:[%s1505_s3 + $0x48] sm:$0xff] %v978_v61   ;;  %v860_v10 = vunpack.c.l.bf16 %v1103_v60  ;;  %v861_v11 = vunpack.c.h.bf16 %v1103_v60 }
  0x1f   :  { %v175_v8 = vmul.f32 %v856_v63, %v1178_v1  ;;  %v176_v9 = vmul.f32 %v857_v0, %v1178_v1  ;;  %1130 = vst [vmem:[%s1505_s3 + $0x50] sm:$0xff] %v983_v3   ;;  %v988_v13 = vpack.c.bf16 %v307_v4, %v306_v62  ;;  %v864_v16 = vunpack.c.l.bf16 %v1104_v2 }
  0x20   :  { %v245_v14 = vadd.f32 %v1192_v7, %v174_v5  ;;  %v308_v15 = vmax.f32 %v244_v6, 0.0  ;;  %v177_v19 = vmul.f32 %v860_v10, %v1178_v1  ;;  %v178_v20 = vmul.f32 %v861_v11, %v1178_v1 }
  0x21   :  { %v246_v17 = vadd.f32 %v1192_v7, %v175_v8  ;;  %v247_v18 = vadd.f32 %v1192_v7, %v176_v9  ;;  %1131 = vst [vmem:[%s1505_s3 + $0x58] sm:$0xff] %v988_v13   ;;  %v865_v22 = vunpack.c.h.bf16 %v1104_v2  ;;  %v179_v23 = vmul.f32 %v864_v16, %v1178_v1  ;;  %v1110_v2 = vld [vmem:[%s1502_s0 + $0xa8] sm:$0xff]   ;;  %v1111_v16 = vld [vmem:[%s1502_s0 + $0xb0] sm:$0xff]  }
  0x22   :  { %v309_v21 = vmax.f32 %v245_v14, 0.0  ;;  %v868_v24 = vunpack.c.l.bf16 %v1105_v12  ;;  %v248_v27 = vadd.f32 %v1192_v7, %v177_v19  ;;  %v249_v28 = vadd.f32 %v1192_v7, %v178_v20 }
  0x23   :  { %v310_v25 = vmax.f32 %v246_v17, 0.0  ;;  %v311_v26 = vmax.f32 %v247_v18, 0.0  ;;  %v180_v31 = vmul.f32 %v865_v22, %v1178_v1  ;;  %v250_v32 = vadd.f32 %v1192_v7, %v179_v23 }
  0x24   :  { %v993_v30 = vpack.c.bf16 %v309_v21, %v308_v15  ;;  %v869_v33 = vunpack.c.h.bf16 %v1105_v12  ;;  %v312_v36 = vmax.f32 %v248_v27, 0.0  ;;  %v313_v37 = vmax.f32 %v249_v28, 0.0  ;;  %v1112_v21 = vld [vmem:[%s1502_s0 + $0xb8] sm:$0xff]  }
  0x25   :  { %v998_v35 = vpack.c.bf16 %v311_v26, %v310_v25  ;;  %v181_v38 = vmul.f32 %v868_v24, %v1178_v1  ;;  %v251_v39 = vadd.f32 %v1192_v7, %v180_v31  ;;  %v314_v40 = vmax.f32 %v250_v32, 0.0 }
  0x26   :  { %1132 = vst [vmem:[%s1505_s3 + $0x60] sm:$0xff] %v993_v30   ;;  %v182_v41 = vmul.f32 %v869_v33, %v1178_v1  ;;  %v872_v42 = vunpack.c.l.bf16 %v1106_v29  ;;  %v1003_v44 = vpack.c.bf16 %v313_v37, %v312_v36  ;;  %v873_v46 = vunpack.c.h.bf16 %v1106_v29 }
  0x27   :  { %1133 = vst [vmem:[%s1505_s3 + $0x68] sm:$0xff] %v998_v35   ;;  %v252_v45 = vadd.f32 %v1192_v7, %v181_v38  ;;  %v876_v47 = vunpack.c.l.bf16 %v1107_v34  ;;  %v315_v48 = vmax.f32 %v251_v39, 0.0  ;;  %v877_v51 = vunpack.c.h.bf16 %v1107_v34  ;;  %v1113_v34 = vld [vmem:[%s1502_s0 + $0xc0] sm:$0xff]  }
  0x28   :  { %v253_v49 = vadd.f32 %v1192_v7, %v182_v41  ;;  %v183_v50 = vmul.f32 %v872_v42, %v1178_v1  ;;  %1134 = vst [vmem:[%s1505_s3 + $0x70] sm:$0xff] %v1003_v44   ;;  %v184_v53 = vmul.f32 %v873_v46, %v1178_v1  ;;  %v880_v55 = vunpack.c.l.bf16 %v1108_v43 }
  0x29   :  { %v316_v52 = vmax.f32 %v252_v45, 0.0  ;;  %v185_v54 = vmul.f32 %v876_v47, %v1178_v1  ;;  %v1008_v57 = vpack.c.bf16 %v315_v48, %v314_v40  ;;  %v186_v60 = vmul.f32 %v877_v51, %v1178_v1  ;;  %v1114_v47 = vld [vmem:[%s1502_s0 + $0xc8] sm:$0xff]  }
  0x2a   :  { %v317_v58 = vmax.f32 %v253_v49, 0.0  ;;  %v254_v59 = vadd.f32 %v1192_v7, %v183_v50  ;;  %v255_v61 = vadd.f32 %v1192_v7, %v184_v53  ;;  %v881_v63 = vunpack.c.h.bf16 %v1108_v43 }
  0x2b   :  { %v256_v62 = vadd.f32 %v1192_v7, %v185_v54  ;;  %v187_v0 = vmul.f32 %v880_v55, %v1178_v1  ;;  %1135 = vst [vmem:[%s1505_s3 + $0x78] sm:$0xff] %v1008_v57   ;;  %v257_v5 = vadd.f32 %v1192_v7, %v186_v60  ;;  %v884_v6 = vunpack.c.l.bf16 %v1109_v56 }
  0x2c   :  { %v1013_v3 = vpack.c.bf16 %v317_v58, %v316_v52  ;;  %v318_v4 = vmax.f32 %v254_v59, 0.0  ;;  %v319_v8 = vmax.f32 %v255_v61, 0.0  ;;  %v188_v10 = vmul.f32 %v881_v63, %v1178_v1  ;;  %v1115_v52 = vld [vmem:[%s1502_s0 + $0xd0] sm:$0xff]   ;;  %v1116_v61 = vld [vmem:[%s1502_s0 + $0xd8] sm:$0xff]  }
  0x2d   :  { %v320_v9 = vmax.f32 %v256_v62, 0.0  ;;  %v258_v11 = vadd.f32 %v1192_v7, %v187_v0  ;;  %v321_v12 = vmax.f32 %v257_v5, 0.0  ;;  %v885_v13 = vunpack.c.h.bf16 %v1109_v56 }
  0x2e   :  { %1136 = vst [vmem:[%s1505_s3 + $0x80] sm:$0xff] %v1013_v3   ;;  %v189_v14 = vmul.f32 %v884_v6, %v1178_v1  ;;  %v888_v15 = vunpack.c.l.bf16 %v1110_v2  ;;  %v1018_v17 = vpack.c.bf16 %v319_v8, %v318_v4  ;;  %v259_v18 = vadd.f32 %v1192_v7, %v188_v10 }
  0x2f   :  { %v322_v19 = vmax.f32 %v258_v11, 0.0  ;;  %v889_v20 = vunpack.c.h.bf16 %v1110_v2  ;;  %v1023_v22 = vpack.c.bf16 %v321_v12, %v320_v9  ;;  %v190_v23 = vmul.f32 %v885_v13, %v1178_v1  ;;  %v1117_v12 = vld [vmem:[%s1502_s0 + $0xe0] sm:$0xff]  }
  0x30   :  { %v260_v24 = vadd.f32 %v1192_v7, %v189_v14  ;;  %v191_v25 = vmul.f32 %v888_v15, %v1178_v1  ;;  %1137 = vst [vmem:[%s1505_s3 + $0x88] sm:$0xff] %v1018_v17   ;;  %v323_v26 = vmax.f32 %v259_v18, 0.0  ;;  %v892_v28 = vunpack.c.l.bf16 %v1111_v16 }
  0x31   :  { %v192_v27 = vmul.f32 %v889_v20, %v1178_v1  ;;  %v893_v29 = vunpack.c.h.bf16 %v1111_v16  ;;  %1138 = vst [vmem:[%s1505_s3 + $0x90] sm:$0xff] %v1023_v22   ;;  %v261_v30 = vadd.f32 %v1192_v7, %v190_v23  ;;  %v896_v33 = vunpack.c.l.bf16 %v1112_v21 }
  0x32   :  { %v324_v31 = vmax.f32 %v260_v24, 0.0  ;;  %v262_v32 = vadd.f32 %v1192_v7, %v191_v25  ;;  %v1028_v35 = vpack.c.bf16 %v323_v26, %v322_v19  ;;  %v193_v37 = vmul.f32 %v892_v28, %v1178_v1 }
  0x33   :  { %v263_v36 = vadd.f32 %v1192_v7, %v192_v27  ;;  %v194_v38 = vmul.f32 %v893_v29, %v1178_v1  ;;  %v325_v39 = vmax.f32 %v261_v30, 0.0  ;;  %v897_v41 = vunpack.c.h.bf16 %v1112_v21  ;;  %v1118_v21 = vld [vmem:[%s1502_s0 + $0xe8] sm:$0xff]  }
  0x34   :  { %v326_v40 = vmax.f32 %v262_v32, 0.0  ;;  %v195_v42 = vmul.f32 %v896_v33, %v1178_v1  ;;  %1139 = vst [vmem:[%s1505_s3 + $0x98] sm:$0xff] %v1028_v35   ;;  %v264_v44 = vadd.f32 %v1192_v7, %v193_v37  ;;  %v900_v46 = vunpack.c.l.bf16 %v1113_v34 }
  0x35   :  { %v327_v43 = vmax.f32 %v263_v36, 0.0  ;;  %v265_v45 = vadd.f32 %v1192_v7, %v194_v38  ;;  %v1033_v48 = vpack.c.bf16 %v325_v39, %v324_v31  ;;  %v196_v49 = vmul.f32 %v897_v41, %v1178_v1  ;;  %v1120_v39 = vld [vmem:[%s1502_s0 + $0xf8] sm:$0xff]  }
  0x36   :  { %v266_v50 = vadd.f32 %v1192_v7, %v195_v42  ;;  %v901_v51 = vunpack.c.h.bf16 %v1113_v34  ;;  %v328_v54 = vmax.f32 %v264_v44, 0.0  ;;  %v197_v56 = vmul.f32 %v900_v46, %v1178_v1  ;;  %v1119_v34 = vld [vmem:[%s1502_s0 + $0xf0] sm:$0xff]  }
  0x37   :  { %v1038_v53 = vpack.c.bf16 %v327_v43, %v326_v40  ;;  %v329_v55 = vmax.f32 %v265_v45, 0.0  ;;  %1140 = vst [vmem:[%s1505_s3 + $0xa0] sm:$0xff] %v1033_v48   ;;  %v267_v57 = vadd.f32 %v1192_v7, %v196_v49  ;;  %v904_v60 = vunpack.c.l.bf16 %v1114_v47 }
  0x38   :  { %v330_v58 = vmax.f32 %v266_v50, 0.0  ;;  %v198_v59 = vmul.f32 %v901_v51, %v1178_v1  ;;  %v268_v63 = vadd.f32 %v1192_v7, %v197_v56  ;;  %v905_v0 = vunpack.c.h.bf16 %v1114_v47 }
  0x39   :  { %1141 = vst [vmem:[%s1505_s3 + $0xa8] sm:$0xff] %v1038_v53   ;;  %v1043_v62 = vpack.c.bf16 %v329_v55, %v328_v54  ;;  %v908_v2 = vunpack.c.l.bf16 %v1115_v52  ;;  %v331_v3 = vmax.f32 %v267_v57, 0.0  ;;  %v199_v5 = vmul.f32 %v904_v60, %v1178_v1 }
  0x3a   :  { %v269_v4 = vadd.f32 %v1192_v7, %v198_v59  ;;  %v909_v6 = vunpack.c.h.bf16 %v1115_v52  ;;  %v332_v8 = vmax.f32 %v268_v63, 0.0  ;;  %v200_v9 = vmul.f32 %v905_v0, %v1178_v1 }
  0x3b   :  { %1142 = vst [vmem:[%s1505_s3 + $0xb0] sm:$0xff] %v1043_v62   ;;  %v201_v10 = vmul.f32 %v908_v2, %v1178_v1  ;;  %v912_v11 = vunpack.c.l.bf16 %v1116_v61  ;;  %v1048_v13 = vpack.c.bf16 %v331_v3, %v330_v58  ;;  %v270_v15 = vadd.f32 %v1192_v7, %v199_v5 }
  0x3c   :  { %v333_v14 = vmax.f32 %v269_v4, 0.0  ;;  %v202_v16 = vmul.f32 %v909_v6, %v1178_v1  ;;  %v271_v17 = vadd.f32 %v1192_v7, %v200_v9  ;;  %v913_v19 = vunpack.c.h.bf16 %v1116_v61 }
  0x3d   :  { %v272_v18 = vadd.f32 %v1192_v7, %v201_v10  ;;  %v203_v20 = vmul.f32 %v912_v11, %v1178_v1  ;;  %1143 = vst [vmem:[%s1505_s3 + $0xb8] sm:$0xff] %v1048_v13   ;;  %v334_v23 = vmax.f32 %v270_v15, 0.0  ;;  %v916_v25 = vunpack.c.l.bf16 %v1117_v12 }
  0x3e   :  { %v1053_v22 = vpack.c.bf16 %v333_v14, %v332_v8  ;;  %v273_v24 = vadd.f32 %v1192_v7, %v202_v16  ;;  %v335_v26 = vmax.f32 %v271_v17, 0.0  ;;  %v204_v28 = vmul.f32 %v913_v19, %v1178_v1 }
  0x3f   :  { %v336_v27 = vmax.f32 %v272_v18, 0.0  ;;  %v274_v29 = vadd.f32 %v1192_v7, %v203_v20  ;;  %v917_v31 = vunpack.c.h.bf16 %v1117_v12  ;;  %v205_v32 = vmul.f32 %v916_v25, %v1178_v1 }
  0x40   :  { %1144 = vst [vmem:[%s1505_s3 + $0xc0] sm:$0xff] %v1053_v22   ;;  %v337_v30 = vmax.f32 %v273_v24, 0.0  ;;  %v920_v33 = vunpack.c.l.bf16 %v1118_v21  ;;  %v1058_v35 = vpack.c.bf16 %v335_v26, %v334_v23  ;;  %v275_v36 = vadd.f32 %v1192_v7, %v204_v28 }
  0x41   :  { %v338_v37 = vmax.f32 %v274_v29, 0.0  ;;  %v921_v38 = vunpack.c.h.bf16 %v1118_v21  ;;  %v206_v41 = vmul.f32 %v917_v31, %v1178_v1  ;;  %v276_v42 = vadd.f32 %v1192_v7, %v205_v32 }
  0x42   :  { %v1063_v40 = vpack.c.bf16 %v337_v30, %v336_v27  ;;  %v207_v43 = vmul.f32 %v920_v33, %v1178_v1  ;;  %1145 = vst [vmem:[%s1505_s3 + $0xc8] sm:$0xff] %v1058_v35   ;;  %v339_v44 = vmax.f32 %v275_v36, 0.0  ;;  %v924_v46 = vunpack.c.l.bf16 %v1119_v34 }
  0x43   :  { %v208_v45 = vmul.f32 %v921_v38, %v1178_v1  ;;  %v925_v47 = vunpack.c.h.bf16 %v1119_v34  ;;  %v277_v48 = vadd.f32 %v1192_v7, %v206_v41  ;;  %v340_v49 = vmax.f32 %v276_v42, 0.0 }
  0x44   :  { %1146 = vst [vmem:[%s1505_s3 + $0xd0] sm:$0xff] %v1063_v40   ;;  %v278_v50 = vadd.f32 %v1192_v7, %v207_v43  ;;  %v928_v51 = vunpack.c.l.bf16 %v1120_v39  ;;  %v1068_v52 = vpack.c.bf16 %v339_v44, %v338_v37  ;;  %v209_v54 = vmul.f32 %v924_v46, %v1178_v1 }
  0x45   :  { %v279_v53 = vadd.f32 %v1192_v7, %v208_v45  ;;  %v210_v55 = vmul.f32 %v925_v47, %v1178_v1  ;;  %v341_v56 = vmax.f32 %v277_v48, 0.0  ;;  %v929_v58 = vunpack.c.h.bf16 %v1120_v39 }
  0x46   :  { %v342_v57 = vmax.f32 %v278_v50, 0.0  ;;  %v211_v59 = vmul.f32 %v928_v51, %v1178_v1  ;;  %1147 = vst [vmem:[%s1505_s3 + $0xd8] sm:$0xff] %v1068_v52   ;;  %v280_v61 = vadd.f32 %v1192_v7, %v209_v54 }
  0x47   :  { %v343_v60 = vmax.f32 %v279_v53, 0.0  ;;  %v281_v62 = vadd.f32 %v1192_v7, %v210_v55  ;;  %v1073_v63 = vpack.c.bf16 %v341_v56, %v340_v49  ;;  %v212_v0 = vmul.f32 %v929_v58, %v1178_v1 }
  0x48   :  { %v282_v2 = vadd.f32 %v1192_v7, %v211_v59  ;;  %v344_v4 = vmax.f32 %v280_v61, 0.0 }
  0x49   :  { %v1078_v3 = vpack.c.bf16 %v343_v60, %v342_v57  ;;  %v345_v5 = vmax.f32 %v281_v62, 0.0  ;;  %1148 = vst [vmem:[%s1505_s3 + $0xe0] sm:$0xff] %v1073_v63   ;;  %v283_v6 = vadd.f32 %v1192_v7, %v212_v0 }
  0x4a   :  { %v346_v8 = vmax.f32 %v282_v2, 0.0 }
  0x4b   :  { %1149 = vst [vmem:[%s1505_s3 + $0xe8] sm:$0xff] %v1078_v3   ;;  %v1083_v9 = vpack.c.bf16 %v345_v5, %v344_v4  ;;  %v347_v10 = vmax.f32 %v283_v6, 0.0 }
  0x4d   :  { %1150 = vst [vmem:[%s1505_s3 + $0xf0] sm:$0xff] %v1083_v9   ;;  %v1088_v1 = vpack.c.bf16 %v347_v10, %v346_v8 }
  0x4f   :  { %1151 = vst [vmem:[%s1505_s3 + $0xf8] sm:$0xff] %v1088_v1  }

// kernel: basic_block_forward.4
= control target key start
LH: loop header
LB: loop body
LE: loop exit
PB: predicated region body
PF: predicated region fallthrough
CT: control target
= control target key end

     0   :  { %v2703_v0 = vmov 0   ;;  %vm1946_vm0 = vcmask 1040384   ;;  %vm1948_vm1 = vcmask 1041408   ;;  %s3425_s1 = inlined_call_operand.vmem [shape: bf16[384,128], index: 1, kind: input, shape index: {}]   ;;  %s3426_s0 = inlined_call_operand.vmem [shape: bf16[512,384], index: 0, kind: input, shape index: {}]   ;;  %s3427_s2 = inlined_call_operand.vmem [shape: bf16[512,128], index: 2, kind: output, shape index: {0}]   ;;  %s3428_s3 = inlined_call_operand.vmem [shape: f32[1,8,128], index: 3, kind: output, shape index: {1}]  }
   0x1   :  { %846 = vmatprep.subr.bf16.mxu0 %v2703_v0  ;;  %2518 = vmatprep.subr.bf16.mxu1 %v2703_v0  ;;  %v2551_v1 = vld [vmem:[%s3425_s1] sm:$0xff]   ;;  %v2552_v2 = vld [vmem:[%s3425_s1 + $0x8] sm:$0xff]   ;;  %v2553_v3 = vld [vmem:[%s3425_s1 + $0x10] sm:$0xff]  }
   0x2   :  { %847 = vmatpush1.bf16.msra.mxu0 %v2551_v1  ;;  %2534 = vmatpush1.bf16.msra.mxu1 %v2551_v1  ;;  %v2554_v4 = vld [vmem:[%s3425_s1 + $0x18] sm:$0xff]   ;;  %v2555_v5 = vld [vmem:[%s3425_s1 + $0x20] sm:$0xff]   ;;  %v2556_v7 = vld [vmem:[%s3425_s1 + $0x28] sm:$0xff]  }
   0x3   :  { %848 = vmatprep.subr.bf16.mxu0 %v2703_v0  ;;  %2519 = vmatprep.subr.bf16.mxu1 %v2703_v0  ;;  %v2569_v6 = vld [vmem:[%s3426_s0 + $0x4] ss:$12 sps:$4 sm:$0xff]   ;;  %v2558_v10 = vld [vmem:[%s3425_s1 + $0x38] sm:$0xff]   ;;  %v2560_v12 = vld [vmem:[%s3425_s1 + $0x48] sm:$0xff]  }
   0x4   :  { %v2572_v8 = vld [vmem:[%s3426_s0 + $0x244] ss:$12 sps:$4 sm:$0xff]   ;;  %878 = vmatprep.mubr.bf16.mxu0 %v2569_v6  ;;  %v2562_v14 = vld [vmem:[%s3425_s1 + $0x58] sm:$0xff]   ;;  %v2564_v16 = vld [vmem:[%s3425_s1 + $0x68] sm:$0xff]  }
   0x5   :  { %1070 = vmatprep.mubr.bf16.mxu1 %v2572_v8  ;;  %v2557_v9 = vld [vmem:[%s3425_s1 + $0x30] sm:$0xff]   ;;  %v2559_v11 = vld [vmem:[%s3425_s1 + $0x40] sm:$0xff]   ;;  %v2566_v18 = vld [vmem:[%s3425_s1 + $0x78] sm:$0xff]  }
   0x6   :  { %849 = vmatpush1.bf16.msra.mxu0 %v2552_v2  ;;  %2535 = vmatpush1.bf16.msra.mxu1 %v2552_v2  ;;  %v2561_v13 = vld [vmem:[%s3425_s1 + $0x50] sm:$0xff]   ;;  %v2563_v15 = vld [vmem:[%s3425_s1 + $0x60] sm:$0xff]   ;;  %v2573_v22 = vld [vmem:[%s3426_s0 + $0x1c] ss:$12 sps:$4 sm:$0xff]  }
   0x7   :  { %850 = vmatprep.subr.bf16.mxu0 %v2703_v0  ;;  %2520 = vmatprep.subr.bf16.mxu1 %v2703_v0  ;;  %v2565_v17 = vld [vmem:[%s3425_s1 + $0x70] sm:$0xff]   ;;  %v2591_v19 = vld [vmem:[%s3425_s1 + $0x80] sm:$0xff]   ;;  %v2575_v23 = vld [vmem:[%s3426_s0 + $0x25c] ss:$12 sps:$4 sm:$0xff]  }
   0x8   :  { %v2567_v20 = vld [vmem:[%s3426_s0] ss:$12 sps:$4 sm:$0xff]   ;;  %v2577_v25 = vld [vmem:[%s3426_s0 + $0x18] ss:$12 sps:$4 sm:$0xff]   ;;  %v2605_v26 = vld [vmem:[%s3425_s1 + $0x90] sm:$0xff]  }
   0x9   :  { %v2570_v21 = vld [vmem:[%s3426_s0 + $0x240] ss:$12 sps:$4 sm:$0xff]   ;;  %v2578_v27 = vld [vmem:[%s3426_s0 + $0x258] ss:$12 sps:$4 sm:$0xff]   ;;  %v2583_v31 = vld [vmem:[%s3426_s0 + $0x30] ss:$12 sps:$4 sm:$0xff]  }
   0xa   :  { %851 = vmatpush1.bf16.msra.mxu0 %v2553_v3  ;;  %2536 = vmatpush1.bf16.msra.mxu1 %v2553_v3  ;;  %v2598_v24 = vld [vmem:[%s3425_s1 + $0x88] sm:$0xff]   ;;  %v2579_v28 = vld [vmem:[%s3426_s0 + $0x34] ss:$12 sps:$4 sm:$0xff]   ;;  %v2606_v30 = vld [vmem:[%s3425_s1 + $0x98] sm:$0xff]  }
   0xb   :  { %852 = vmatprep.subr.bf16.mxu0 %v2703_v0  ;;  %2521 = vmatprep.subr.bf16.mxu1 %v2703_v0  ;;  %v2581_v29 = vld [vmem:[%s3426_s0 + $0x274] ss:$12 sps:$4 sm:$0xff]   ;;  %v2584_v33 = vld [vmem:[%s3426_s0 + $0x270] ss:$12 sps:$4 sm:$0xff]   ;;  %v2585_v34 = vld [vmem:[%s3426_s0 + $0x4c] ss:$12 sps:$4 sm:$0xff]  }
   0xc   :  { %v2613_v32 = vld [vmem:[%s3425_s1 + $0xa0] sm:$0xff]   ;;  %v2587_v35 = vld [vmem:[%s3426_s0 + $0x28c] ss:$12 sps:$4 sm:$0xff]   ;;  %v2589_v37 = vld [vmem:[%s3426_s0 + $0x48] ss:$12 sps:$4 sm:$0xff]  }
   0xd   :  { %v2614_v36 = vld [vmem:[%s3425_s1 + $0xa8] sm:$0xff]   ;;  %v2592_v39 = vld [vmem:[%s3426_s0 + $0x64] ss:$12 sps:$4 sm:$0xff]   ;;  %v2622_v42 = vld [vmem:[%s3425_s1 + $0xb8] sm:$0xff]  }
   0xe   :  { %853 = vmatpush1.bf16.msra.mxu0 %v2554_v4  ;;  %2537 = vmatpush1.bf16.msra.mxu1 %v2554_v4  ;;  %v2590_v38 = vld [vmem:[%s3426_s0 + $0x288] ss:$12 sps:$4 sm:$0xff]   ;;  %v2594_v40 = vld [vmem:[%s3426_s0 + $0x2a4] ss:$12 sps:$4 sm:$0xff]   ;;  %v2596_v43 = vld [vmem:[%s3426_s0 + $0x60] ss:$12 sps:$4 sm:$0xff]  }
   0xf   :  { %854 = vmatprep.subr.bf16.mxu0 %v2703_v0  ;;  %2522 = vmatprep.subr.bf16.mxu1 %v2703_v0  ;;  %v2621_v41 = vld [vmem:[%s3425_s1 + $0xb0] sm:$0xff]   ;;  %v2597_v44 = vld [vmem:[%s3426_s0 + $0x2a0] ss:$12 sps:$4 sm:$0xff]   ;;  %v2599_v45 = vld [vmem:[%s3426_s0 + $0x7c] ss:$12 sps:$4 sm:$0xff]  }
  0x10   :  { %v2601_v46 = vld [vmem:[%s3426_s0 + $0x2bc] ss:$12 sps:$4 sm:$0xff]   ;;  %v2603_v47 = vld [vmem:[%s3426_s0 + $0x78] ss:$12 sps:$4 sm:$0xff]   ;;  %v2607_v49 = vld [vmem:[%s3426_s0 + $0x94] ss:$12 sps:$4 sm:$0xff]  }
  0x11   :  { %v2604_v48 = vld [vmem:[%s3426_s0 + $0x2b8] ss:$12 sps:$4 sm:$0xff]   ;;  %v2609_v50 = vld [vmem:[%s3426_s0 + $0x2d4] ss:$12 sps:$4 sm:$0xff]   ;;  %v2611_v51 = vld [vmem:[%s3426_s0 + $0x90] ss:$12 sps:$4 sm:$0xff]  }
  0x12   :  { %855 = vmatpush1.bf16.msra.mxu0 %v2555_v5  ;;  %2538 = vmatpush1.bf16.msra.mxu1 %v2555_v5  ;;  %v2612_v52 = vld [vmem:[%s3426_s0 + $0x2d0] ss:$12 sps:$4 sm:$0xff]   ;;  %v2615_v53 = vld [vmem:[%s3426_s0 + $0xac] ss:$12 sps:$4 sm:$0xff]   ;;  %v2619_v55 = vld [vmem:[%s3426_s0 + $0xa8] ss:$12 sps:$4 sm:$0xff]  }
  0x13   :  { %856 = vmatprep.subr.bf16.mxu0 %v2703_v0  ;;  %2523 = vmatprep.subr.bf16.mxu1 %v2703_v0  ;;  %v2617_v54 = vld [vmem:[%s3426_s0 + $0x2ec] ss:$12 sps:$4 sm:$0xff]   ;;  %v2620_v56 = vld [vmem:[%s3426_s0 + $0x2e8] ss:$12 sps:$4 sm:$0xff]   ;;  %v2623_v57 = vld [vmem:[%s3426_s0 + $0xc4] ss:$12 sps:$4 sm:$0xff]  }
  0x14   :  { %v2625_v58 = vld [vmem:[%s3426_s0 + $0x8] ss:$12 sps:$4 sm:$0xff]   ;;  %v2626_v59 = vld [vmem:[%s3426_s0 + $0xc0] ss:$12 sps:$4 sm:$0xff]   ;;  %v2630_v62 = vld [vmem:[%s3426_s0 + $0x38] ss:$12 sps:$4 sm:$0xff]  }
  0x15   :  { %v2627_v60 = vld [vmem:[%s3426_s0 + $0x20] ss:$12 sps:$4 sm:$0xff]   ;;  %v2628_v61 = vld [vmem:[%s3426_s0 + $0xdc] ss:$12 sps:$4 sm:$0xff]   ;;  %v2631_v63 = vld [vmem:[%s3426_s0 + $0xd8] ss:$12 sps:$4 sm:$0xff]  }
  0x16   :  { %857 = vmatpush1.bf16.msra.mxu0 %v2556_v7  ;;  %2539 = vmatpush1.bf16.msra.mxu1 %v2556_v7  ;;  %v2633_v1 = vld [vmem:[%s3426_s0 + $0xf4] ss:$12 sps:$4 sm:$0xff]   ;;  %v2636_v3 = vld [vmem:[%s3426_s0 + $0xf0] ss:$12 sps:$4 sm:$0xff]   ;;  %v2638_v5 = vld [vmem:[%s3426_s0 + $0x10c] ss:$12 sps:$4 sm:$0xff]  }
  0x17   :  { %858 = vmatprep.subr.bf16.mxu0 %v2703_v0  ;;  %2524 = vmatprep.subr.bf16.mxu1 %v2703_v0  ;;  %v2635_v2 = vld [vmem:[%s3426_s0 + $0x68] ss:$12 sps:$4 sm:$0xff]   ;;  %v2637_v4 = vld [vmem:[%s3426_s0 + $0x80] ss:$12 sps:$4 sm:$0xff]   ;;  %v2640_v6 = vld [vmem:[%s3426_s0 + $0x98] ss:$12 sps:$4 sm:$0xff]  }
  0x18   :  { %v2641_v7 = vld [vmem:[%s3426_s0 + $0x108] ss:$12 sps:$4 sm:$0xff]   ;;  %v2642_v8 = vld [vmem:[%s3426_s0 + $0xb0] ss:$12 sps:$4 sm:$0xff]  }
  0x1a   :  { %859 = vmatpush1.bf16.msra.mxu0 %v2557_v9  ;;  %2540 = vmatpush1.bf16.msra.mxu1 %v2557_v9  ;;  %v2643_v9 = vld [vmem:[%s3426_s0 + $0x124] ss:$12 sps:$4 sm:$0xff]  }
  0x1b   :  { %860 = vmatprep.subr.bf16.mxu0 %v2703_v0  ;;  %2525 = vmatprep.subr.bf16.mxu1 %v2703_v0 }
  0x1e   :  { %861 = vmatpush1.bf16.msra.mxu0 %v2558_v10  ;;  %2541 = vmatpush1.bf16.msra.mxu1 %v2558_v10  ;;  %v2645_v10 = vld [vmem:[%s3426_s0 + $0xc8] ss:$12 sps:$4 sm:$0xff]  }
  0x1f   :  { %862 = vmatprep.subr.bf16.mxu0 %v2703_v0  ;;  %2526 = vmatprep.subr.bf16.mxu1 %v2703_v0 }
  0x22   :  { %863 = vmatpush1.bf16.msra.mxu0 %v2559_v11  ;;  %2542 = vmatpush1.bf16.msra.mxu1 %v2559_v11  ;;  %v2646_v11 = vld [vmem:[%s3426_s0 + $0x120] ss:$12 sps:$4 sm:$0xff]  }
  0x23   :  { %864 = vmatprep.subr.bf16.mxu0 %v2703_v0  ;;  %2527 = vmatprep.subr.bf16.mxu1 %v2703_v0 }
  0x26   :  { %865 = vmatpush1.bf16.msra.mxu0 %v2560_v12  ;;  %2543 = vmatpush1.bf16.msra.mxu1 %v2560_v12  ;;  %v2647_v12 = vld [vmem:[%s3426_s0 + $0xe0] ss:$12 sps:$4 sm:$0xff]  }
  0x27   :  { %866 = vmatprep.subr.bf16.mxu0 %v2703_v0  ;;  %2528 = vmatprep.subr.bf16.mxu1 %v2703_v0 }
  0x2a   :  { %867 = vmatpush1.bf16.msra.mxu0 %v2561_v13  ;;  %2544 = vmatpush1.bf16.msra.mxu1 %v2561_v13  ;;  %v2648_v13 = vld [vmem:[%s3426_s0 + $0x13c] ss:$12 sps:$4 sm:$0xff]  }
  0x2b   :  { %868 = vmatprep.subr.bf16.mxu0 %v2703_v0  ;;  %2529 = vmatprep.subr.bf16.mxu1 %v2703_v0 }
  0x2e   :  { %869 = vmatpush1.bf16.msra.mxu0 %v2562_v14  ;;  %2545 = vmatpush1.bf16.msra.mxu1 %v2562_v14  ;;  %v2650_v14 = vld [vmem:[%s3426_s0 + $0xf8] ss:$12 sps:$4 sm:$0xff]  }
  0x2f   :  { %870 = vmatprep.subr.bf16.mxu0 %v2703_v0  ;;  %2530 = vmatprep.subr.bf16.mxu1 %v2703_v0 }
  0x32   :  { %871 = vmatpush1.bf16.msra.mxu0 %v2563_v15  ;;  %2546 = vmatpush1.bf16.msra.mxu1 %v2563_v15  ;;  %v2651_v15 = vld [vmem:[%s3426_s0 + $0x138] ss:$12 sps:$4 sm:$0xff]  }
  0x33   :  { %872 = vmatprep.subr.bf16.mxu0 %v2703_v0  ;;  %2531 = vmatprep.subr.bf16.mxu1 %v2703_v0 }
  0x36   :  { %873 = vmatpush1.bf16.msra.mxu0 %v2564_v16  ;;  %2547 = vmatpush1.bf16.msra.mxu1 %v2564_v16  ;;  %v2652_v16 = vld [vmem:[%s3426_s0 + $0x110] ss:$12 sps:$4 sm:$0xff]  }
  0x37   :  { %874 = vmatprep.subr.bf16.mxu0 %v2703_v0  ;;  %2532 = vmatprep.subr.bf16.mxu1 %v2703_v0 }
  0x3a   :  { %875 = vmatpush1.bf16.msra.mxu0 %v2565_v17  ;;  %2548 = vmatpush1.bf16.msra.mxu1 %v2565_v17  ;;  %v2653_v17 = vld [vmem:[%s3426_s0 + $0x154] ss:$12 sps:$4 sm:$0xff]  }
  0x3b   :  { %876 = vmatprep.subr.bf16.mxu0 %v2703_v0  ;;  %2533 = vmatprep.subr.bf16.mxu1 %v2703_v0  ;;  %v2632_v0 = vld [vmem:[%s3426_s0 + $0x50] ss:$12 sps:$4 sm:$0xff]  }
  0x3e   :  { %877 = vmatpush1.bf16.msra.mxu0 %v2566_v18  ;;  %2549 = vmatpush1.bf16.msra.mxu1 %v2566_v18  ;;  %v2655_v18 = vld [vmem:[%s3426_s0 + $0x128] ss:$12 sps:$4 sm:$0xff]  }
  0x3f   :  { %2438 = vmatprep.subr.bf16.mxu1 %v2591_v19 }
  0x41   :  { %879 = vmatmul.mubr.bf16.vlgmr.msra.gmra.mrb[0].mxu0 %v2567_v20  ;;  %1071 = vmatmul.mubr.bf16.vlgmr.msra.gmra.mrb[0].mxu1 %v2570_v21  ;;  %v2657_v20 = vld [vmem:[%s3426_s0 + $0x140] ss:$12 sps:$4 sm:$0xff]  }
  0x42   :  { %886 = vmatprep.mubr.bf16.mxu0 %v2573_v22  ;;  %1078 = vmatprep.mubr.bf16.mxu1 %v2575_v23  ;;  %v2658_v21 = vld [vmem:[%s3426_s0 + $0x16c] ss:$12 sps:$4 sm:$0xff]   ;;  %v2661_v23 = vld [vmem:[%s3426_s0 + $0x168] ss:$12 sps:$4 sm:$0xff]  }
  0x43   :  { %2439 = vmatpush3.bf16.msra.mxu1 %v2591_v19  ;;  %v2656_v19 = vld [vmem:[%s3426_s0 + $0x150] ss:$12 sps:$4 sm:$0xff]   ;;  %v2660_v22 = vld [vmem:[%s3426_s0 + $0x158] ss:$12 sps:$4 sm:$0xff]  }
  0x44   :  { %2440 = vmatprep.subr.bf16.mxu1 %v2598_v24 }
  0x47   :  { %2441 = vmatpush3.bf16.msra.mxu1 %v2598_v24  ;;  %v2662_v24 = vld [vmem:[%s3426_s0 + $0x170] ss:$12 sps:$4 sm:$0xff]  }
  0x48   :  { %2442 = vmatprep.subr.bf16.mxu1 %v2605_v26 }
  0x49   :  { %887 = vmatmul.mubr.bf16.gmra.mrb[4].mxu0 %v2577_v25  ;;  %1079 = vmatmul.mubr.bf16.gmra.mrb[4].mxu1 %v2578_v27  ;;  %v2663_v25 = vld [vmem:[%s3426_s0 + $0x184] ss:$12 sps:$4 sm:$0xff]   ;;  %v2666_v27 = vld [vmem:[%s3426_s0 + $0x180] ss:$12 sps:$4 sm:$0xff]  }
  0x4a   :  { %894 = vmatprep.mubr.bf16.mxu0 %v2579_v28  ;;  %1086 = vmatprep.mubr.bf16.mxu1 %v2581_v29  ;;  %v2667_v28 = vld [vmem:[%s3426_s0 + $0x1a0] ss:$12 sps:$4 sm:$0xff]   ;;  %v2668_v29 = vld [vmem:[%s3426_s0 + $0x19c] ss:$12 sps:$4 sm:$0xff]  }
  0x4b   :  { %2443 = vmatpush3.bf16.msra.mxu1 %v2605_v26  ;;  %v2665_v26 = vld [vmem:[%s3426_s0 + $0x188] ss:$12 sps:$4 sm:$0xff]  }
  0x4c   :  { %2444 = vmatprep.subr.bf16.mxu1 %v2606_v30 }
  0x4f   :  { %2445 = vmatpush3.bf16.msra.mxu1 %v2606_v30  ;;  %v2670_v30 = vld [vmem:[%s3426_s0 + $0x1b8] ss:$12 sps:$4 sm:$0xff]  }
  0x50   :  { %2446 = vmatprep.subr.bf16.mxu1 %v2613_v32 }
  0x51   :  { %895 = vmatmul.mubr.bf16.gmra.mrb[8].mxu0 %v2583_v31  ;;  %1087 = vmatmul.mubr.bf16.gmra.mrb[8].mxu1 %v2584_v33  ;;  %v2671_v31 = vld [vmem:[%s3426_s0 + $0x198] ss:$12 sps:$4 sm:$0xff]   ;;  %v2673_v33 = vld [vmem:[%s3426_s0 + $0x1b4] ss:$12 sps:$4 sm:$0xff]  }
  0x52   :  { %902 = vmatprep.mubr.bf16.mxu0 %v2585_v34  ;;  %1094 = vmatprep.mubr.bf16.mxu1 %v2587_v35  ;;  %v2675_v34 = vld [vmem:[%s3426_s0 + $0x1e8] ss:$12 sps:$4 sm:$0xff]   ;;  %v2676_v35 = vld [vmem:[%s3426_s0 + $0x1b0] ss:$12 sps:$4 sm:$0xff]  }
  0x53   :  { %2447 = vmatpush3.bf16.msra.mxu1 %v2613_v32  ;;  %v2672_v32 = vld [vmem:[%s3426_s0 + $0x1d0] ss:$12 sps:$4 sm:$0xff]  }
  0x54   :  { %2448 = vmatprep.subr.bf16.mxu1 %v2614_v36 }
  0x57   :  { %2449 = vmatpush3.bf16.msra.mxu1 %v2614_v36  ;;  %v2677_v36 = vld [vmem:[%s3426_s0 + $0x200] ss:$12 sps:$4 sm:$0xff]  }
  0x58   :  { %2450 = vmatprep.subr.bf16.mxu1 %v2621_v41 }
  0x59   :  { %903 = vmatmul.mubr.bf16.gmra.mrb[12].mxu0 %v2589_v37  ;;  %1095 = vmatmul.mubr.bf16.gmra.mrb[12].mxu1 %v2590_v38  ;;  %v2678_v37 = vld [vmem:[%s3426_s0 + $0x1cc] ss:$12 sps:$4 sm:$0xff]  }
  0x5a   :  { %910 = vmatprep.mubr.bf16.mxu0 %v2592_v39  ;;  %1102 = vmatprep.mubr.bf16.mxu1 %v2594_v40  ;;  %v2680_v38 = vld [vmem:[%s3426_s0 + $0x218] ss:$12 sps:$4 sm:$0xff]   ;;  %v2681_v39 = vld [vmem:[%s3426_s0 + $0x1c8] ss:$12 sps:$4 sm:$0xff]   ;;  %v2682_v40 = vld [vmem:[%s3426_s0 + $0x230] ss:$12 sps:$4 sm:$0xff]  }
  0x5b   :  { %2451 = vmatpush3.bf16.msra.mxu1 %v2621_v41  ;;  %v2683_v41 = vld [vmem:[%s3426_s0 + $0x1e4] ss:$12 sps:$4 sm:$0xff]  }
  0x5c   :  { %2452 = vmatprep.subr.bf16.mxu1 %v2622_v42 }
  0x5f   :  { %2453 = vmatpush3.bf16.msra.mxu1 %v2622_v42  ;;  %v2685_v42 = vld [vmem:[%s3426_s0 + $0x248] ss:$12 sps:$4 sm:$0xff]  }
  0x61   :  { %911 = vmatmul.mubr.bf16.gmra.mrb[16].mxu0 %v2596_v43  ;;  %1103 = vmatmul.mubr.bf16.gmra.mrb[16].mxu1 %v2597_v44  ;;  %v2686_v43 = vld [vmem:[%s3426_s0 + $0x1e0] ss:$12 sps:$4 sm:$0xff]  }
  0x62   :  { %918 = vmatprep.mubr.bf16.mxu0 %v2599_v45  ;;  %1110 = vmatprep.mubr.bf16.mxu1 %v2601_v46  ;;  %v2687_v44 = vld [vmem:[%s3426_s0 + $0x260] ss:$12 sps:$4 sm:$0xff]   ;;  %v2688_v45 = vld [vmem:[%s3426_s0 + $0x1fc] ss:$12 sps:$4 sm:$0xff]   ;;  %v2690_v46 = vld [vmem:[%s3426_s0 + $0x278] ss:$12 sps:$4 sm:$0xff]  }
  0x69   :  { %919 = vmatmul.mubr.bf16.gmra.mrb[20].mxu0 %v2603_v47  ;;  %1111 = vmatmul.mubr.bf16.gmra.mrb[20].mxu1 %v2604_v48  ;;  %v2691_v47 = vld [vmem:[%s3426_s0 + $0x1f8] ss:$12 sps:$4 sm:$0xff]   ;;  %v2692_v48 = vld [vmem:[%s3426_s0 + $0x290] ss:$12 sps:$4 sm:$0xff]  }
  0x6a   :  { %926 = vmatprep.mubr.bf16.mxu0 %v2607_v49  ;;  %1118 = vmatprep.mubr.bf16.mxu1 %v2609_v50  ;;  %v2693_v49 = vld [vmem:[%s3426_s0 + $0x214] ss:$12 sps:$4 sm:$0xff]  }
  0x6b   :  { %v2695_v50 = vld [vmem:[%s3426_s0 + $0x2a8] ss:$12 sps:$4 sm:$0xff]  }
  0x71   :  { %927 = vmatmul.mubr.bf16.gmra.mrb[24].mxu0 %v2611_v51  ;;  %1119 = vmatmul.mubr.bf16.gmra.mrb[24].mxu1 %v2612_v52  ;;  %v2696_v51 = vld [vmem:[%s3426_s0 + $0x210] ss:$12 sps:$4 sm:$0xff]   ;;  %v2697_v52 = vld [vmem:[%s3426_s0 + $0x2c0] ss:$12 sps:$4 sm:$0xff]  }
  0x72   :  { %934 = vmatprep.mubr.bf16.mxu0 %v2615_v53  ;;  %1126 = vmatprep.mubr.bf16.mxu1 %v2617_v54  ;;  %v2698_v53 = vld [vmem:[%s3426_s0 + $0x22c] ss:$12 sps:$4 sm:$0xff]  }
  0x73   :  { %v2700_v54 = vld [vmem:[%s3426_s0 + $0x2d8] ss:$12 sps:$4 sm:$0xff]  }
  0x79   :  { %935 = vmatmul.mubr.bf16.gmra.mrb[28].mxu0 %v2619_v55  ;;  %1127 = vmatmul.mubr.bf16.gmra.mrb[28].mxu1 %v2620_v56  ;;  %v2701_v55 = vld [vmem:[%s3426_s0 + $0x228] ss:$12 sps:$4 sm:$0xff]   ;;  %v2702_v56 = vld [vmem:[%s3426_s0 + $0x2f0] ss:$12 sps:$4 sm:$0xff]  }
  0x7a   :  { %942 = vmatprep.mubr.bf16.mxu0 %v2623_v57  ;;  %2454 = vmatprep.mubr.bf16.mxu1 %v2625_v58 }
  0x81   :  { %943 = vmatmul.mubr.bf16.gmra.mrb[32].mxu0 %v2626_v59  ;;  %2455 = vmatmul.mubr.bf16.vlgmr.msra.gmra.mrb[32].mxu1 %v2627_v60 }
  0x82   :  { %950 = vmatprep.mubr.bf16.mxu0 %v2628_v61  ;;  %2458 = vmatprep.mubr.bf16.mxu1 %v2630_v62 }
  0x89   :  { %951 = vmatmul.mubr.bf16.gmra.mrb[36].mxu0 %v2631_v63  ;;  %2459 = vmatmul.mubr.bf16.gmra.mrb[36].mxu1 %v2632_v0 }
  0x8a   :  { %958 = vmatprep.mubr.bf16.mxu0 %v2633_v1  ;;  %2462 = vmatprep.mubr.bf16.mxu1 %v2635_v2 }
  0x91   :  { %959 = vmatmul.mubr.bf16.gmra.mrb[40].mxu0 %v2636_v3  ;;  %2463 = vmatmul.mubr.bf16.gmra.mrb[40].mxu1 %v2637_v4 }
  0x92   :  { %966 = vmatprep.mubr.bf16.mxu0 %v2638_v5  ;;  %2466 = vmatprep.mubr.bf16.mxu1 %v2640_v6 }
  0x99   :  { %967 = vmatmul.mubr.bf16.gmra.mrb[44].mxu0 %v2641_v7  ;;  %2467 = vmatmul.mubr.bf16.gmra.mrb[44].mxu1 %v2642_v8 }
  0x9a   :  { %974 = vmatprep.mubr.bf16.mxu0 %v2643_v9  ;;  %2470 = vmatprep.mubr.bf16.mxu1 %v2645_v10 }
  0xa1   :  { %975 = vmatmul.mubr.bf16.gmra.mrb[48].mxu0 %v2646_v11  ;;  %2471 = vmatmul.mubr.bf16.gmra.mrb[48].mxu1 %v2647_v12 }
  0xa2   :  { %982 = vmatprep.mubr.bf16.mxu0 %v2648_v13  ;;  %2474 = vmatprep.mubr.bf16.mxu1 %v2650_v14 }
  0xa9   :  { %983 = vmatmul.mubr.bf16.gmra.mrb[52].mxu0 %v2651_v15  ;;  %2475 = vmatmul.mubr.bf16.gmra.mrb[52].mxu1 %v2652_v16 }
  0xaa   :  { %990 = vmatprep.mubr.bf16.mxu0 %v2653_v17  ;;  %2478 = vmatprep.mubr.bf16.mxu1 %v2655_v18 }
  0xb1   :  { %991 = vmatmul.mubr.bf16.gmra.mrb[56].mxu0 %v2656_v19  ;;  %2479 = vmatmul.mubr.bf16.gmra.mrb[56].mxu1 %v2657_v20 }
  0xb2   :  { %998 = vmatprep.mubr.bf16.mxu0 %v2658_v21  ;;  %2482 = vmatprep.mubr.bf16.mxu1 %v2660_v22 }
  0xb9   :  { %999 = vmatmul.mubr.bf16.gmra.mrb[60].mxu0 %v2661_v23  ;;  %2483 = vmatmul.mubr.bf16.gmra.mrb[60].mxu1 %v2662_v24 }
  0xba   :  { %1006 = vmatprep.mubr.bf16.mxu0 %v2663_v25  ;;  %2486 = vmatprep.mubr.bf16.mxu1 %v2665_v26 }
  0xc1   :  { %1007 = vmatmul.mubr.bf16.gmra.mrb[64].mxu0 %v2666_v27  ;;  %2487 = vmatmul.mubr.bf16.gmra.mrb[64].mxu1 %v2667_v28 }
  0xc2   :  { %1014 = vmatprep.mubr.bf16.mxu0 %v2668_v29  ;;  %2490 = vmatprep.mubr.bf16.mxu1 %v2670_v30 }
  0xc9   :  { %1015 = vmatmul.mubr.bf16.gmra.mrb[68].mxu0 %v2671_v31  ;;  %2491 = vmatmul.mubr.bf16.gmra.mrb[68].mxu1 %v2672_v32 }
  0xca   :  { %1022 = vmatprep.mubr.bf16.mxu0 %v2673_v33  ;;  %2494 = vmatprep.mubr.bf16.mxu1 %v2675_v34 }
  0xd1   :  { %1023 = vmatmul.mubr.bf16.gmra.mrb[72].mxu0 %v2676_v35  ;;  %2495 = vmatmul.mubr.bf16.gmra.mrb[72].mxu1 %v2677_v36 }
  0xd2   :  { %1030 = vmatprep.mubr.bf16.mxu0 %v2678_v37  ;;  %2498 = vmatprep.mubr.bf16.mxu1 %v2680_v38 }
  0xd9   :  { %1031 = vmatmul.mubr.bf16.gmra.mrb[76].mxu0 %v2681_v39  ;;  %2499 = vmatmul.mubr.bf16.gmra.mrb[76].mxu1 %v2682_v40 }
  0xda   :  { %1038 = vmatprep.mubr.bf16.mxu0 %v2683_v41  ;;  %2502 = vmatprep.mubr.bf16.mxu1 %v2685_v42 }
  0xe1   :  { %1039 = vmatmul.mubr.bf16.gmra.mrb[80].mxu0 %v2686_v43  ;;  %2503 = vmatmul.mubr.bf16.gmra.mrb[80].mxu1 %v2687_v44 }
  0xe2   :  { %1046 = vmatprep.mubr.bf16.mxu0 %v2688_v45  ;;  %2506 = vmatprep.mubr.bf16.mxu1 %v2690_v46 }
  0xe9   :  { %1047 = vmatmul.mubr.bf16.gmra.mrb[84].mxu0 %v2691_v47  ;;  %2507 = vmatmul.mubr.bf16.gmra.mrb[84].mxu1 %v2692_v48 }
  0xea   :  { %1054 = vmatprep.mubr.bf16.mxu0 %v2693_v49  ;;  %2510 = vmatprep.mubr.bf16.mxu1 %v2695_v50 }
  0xf1   :  { %1055 = vmatmul.mubr.bf16.gmra.mrb[88].mxu0 %v2696_v51  ;;  %2511 = vmatmul.mubr.bf16.gmra.mrb[88].mxu1 %v2697_v52 }
  0xf2   :  { %1062 = vmatprep.mubr.bf16.mxu0 %v2698_v53  ;;  %2514 = vmatprep.mubr.bf16.mxu1 %v2700_v54 }
  0xf9   :  { %1063 = vmatmul.mubr.bf16.gmra.mrb[92].mxu0 %v2701_v55  ;;  %2515 = vmatmul.mubr.bf16.gmra.mrb[92].mxu1 %v2702_v56 }
 0x114   :  { %v3116_v57 = vpop.f32.mrb[0].mxu0  ;;  %v3118_v58 = vpop.f32.mrb[0].mxu1 }
 0x115   :  { %v882_v59 = vpop.f32.mrb[1].mxu0  ;;  %v1074_v60 = vpop.f32.mrb[1].mxu1 }
 0x116   :  { %v3120_v61 = vpop.f32.mrb[2].mxu0  ;;  %v3122_v62 = vpop.f32.mrb[2].mxu1 }
 0x117   :  { %v885_v63 = vpop.f32.mrb[3].mxu0  ;;  %v1077_v0 = vpop.f32.mrb[3].mxu1 }
 0x11c   :  { %v888_v1 = vpop.f32.mrb[4].mxu0  ;;  %v3124_v2 = vpop.f32.mrb[4].mxu1 }
 0x11d   :  { %v890_v3 = vpop.f32.mrb[5].mxu0  ;;  %v1082_v4 = vpop.f32.mrb[5].mxu1 }
 0x11e   :  { %v891_v5 = vpop.f32.mrb[6].mxu0  ;;  %v3126_v6 = vpop.f32.mrb[6].mxu1 }
 0x11f   :  { %v893_v7 = vpop.f32.mrb[7].mxu0  ;;  %v1085_v8 = vpop.f32.mrb[7].mxu1 }
 0x124   :  { %v3128_v9 = vpop.f32.mrb[8].mxu0  ;;  %v3130_v10 = vpop.f32.mrb[8].mxu1 }
 0x125   :  { %v898_v11 = vpop.f32.mrb[9].mxu0  ;;  %v1090_v12 = vpop.f32.mrb[9].mxu1 }
 0x126   :  { %v3132_v13 = vpop.f32.mrb[10].mxu0  ;;  %v3134_v14 = vpop.f32.mrb[10].mxu1 }
 0x127   :  { %v901_v15 = vpop.f32.mrb[11].mxu0  ;;  %v1093_v16 = vpop.f32.mrb[11].mxu1 }
 0x12c   :  { %v3136_v17 = vpop.f32.mrb[12].mxu0  ;;  %v3138_v18 = vpop.f32.mrb[12].mxu1 }
 0x12d   :  { %v906_v19 = vpop.f32.mrb[13].mxu0  ;;  %v1098_v20 = vpop.f32.mrb[13].mxu1 }
 0x12e   :  { %v3140_v21 = vpop.f32.mrb[14].mxu0  ;;  %v3142_v22 = vpop.f32.mrb[14].mxu1 }
 0x12f   :  { %v909_v23 = vpop.f32.mrb[15].mxu0  ;;  %v1101_v24 = vpop.f32.mrb[15].mxu1 }
 0x134   :  { %v3144_v25 = vpop.f32.mrb[16].mxu0  ;;  %v3146_v26 = vpop.f32.mrb[16].mxu1 }
 0x135   :  { %v914_v27 = vpop.f32.mrb[17].mxu0  ;;  %v1106_v28 = vpop.f32.mrb[17].mxu1 }
 0x136   :  { %v3148_v29 = vpop.f32.mrb[18].mxu0  ;;  %v3150_v30 = vpop.f32.mrb[18].mxu1 }
 0x137   :  { %v917_v31 = vpop.f32.mrb[19].mxu0  ;;  %v1109_v32 = vpop.f32.mrb[19].mxu1 }
 0x13c   :  { %v3152_v33 = vpop.f32.mrb[20].mxu0  ;;  %v3154_v34 = vpop.f32.mrb[20].mxu1 }
 0x13d   :  { %v922_v35 = vpop.f32.mrb[21].mxu0  ;;  %v1114_v36 = vpop.f32.mrb[21].mxu1 }
 0x13e   :  { %v3156_v37 = vpop.f32.mrb[22].mxu0  ;;  %v3158_v38 = vpop.f32.mrb[22].mxu1 }
 0x13f   :  { %v925_v39 = vpop.f32.mrb[23].mxu0  ;;  %v1117_v40 = vpop.f32.mrb[23].mxu1 }
 0x144   :  { %v3160_v41 = vpop.f32.mrb[24].mxu0  ;;  %v3162_v42 = vpop.f32.mrb[24].mxu1 }
 0x145   :  { %v930_v43 = vpop.f32.mrb[25].mxu0  ;;  %v1122_v44 = vpop.f32.mrb[25].mxu1 }
 0x146   :  { %v3164_v45 = vpop.f32.mrb[26].mxu0  ;;  %v3166_v46 = vpop.f32.mrb[26].mxu1 }
 0x147   :  { %v933_v47 = vpop.f32.mrb[27].mxu0  ;;  %v1125_v48 = vpop.f32.mrb[27].mxu1 }
 0x14c   :  { %v3168_v49 = vpop.f32.mrb[28].mxu0  ;;  %v3170_v50 = vpop.f32.mrb[28].mxu1 }
 0x14d   :  { %v938_v51 = vpop.f32.mrb[29].mxu0  ;;  %v1130_v52 = vpop.f32.mrb[29].mxu1 }
 0x14e   :  { %v3172_v53 = vpop.f32.mrb[30].mxu0  ;;  %v3174_v54 = vpop.f32.mrb[30].mxu1 }
 0x14f   :  { %v941_v55 = vpop.f32.mrb[31].mxu0  ;;  %v1133_v56 = vpop.f32.mrb[31].mxu1 }
 0x154   :  { %v3176_v59 = vpop.f32.mrb[32].mxu0  ;;  %v2456_v60 = vpop.f32.mrb[32].mxu1 }
 0x155   :  { %v1178_v63 = vadd.f32 %v2456_v60, %v888_v1  ;;  %v946_v0 = vpop.f32.mrb[33].mxu0  ;;  %v1169_v3 = vpop.f32.mrb[33].mxu1 }
 0x156   :  { %v1170_v4 = vadd.f32 %v1169_v3, %v3116_v57  ;;  %v3179_v7 = vpop.f32.mrb[34].mxu0  ;;  %v2457_v8 = vpop.f32.mrb[34].mxu1 }
 0x157   :  { %v1181_v11 = vadd.f32 %v2457_v8, %v891_v5  ;;  %v949_v12 = vpop.f32.mrb[35].mxu0  ;;  %v1172_v15 = vpop.f32.mrb[35].mxu1  ;;  %v1815_v1 = vmul.f32 %v1178_v63, %v1178_v63 }
 0x158   :  { %v1173_v16 = vadd.f32 %v1172_v15, %v3120_v61  ;;  %v1813_v20 = vmul.f32 %v1170_v4, %v1170_v4 }
 0x159   :  { %v2215_v19 = vpack.c.bf16 %v1181_v11, %v1178_v63  ;;  %v1816_v36 = vmul.f32 %v1181_v11, %v1181_v11 }
 0x15a   :  { %v2210_v23 = vpack.c.bf16 %v1173_v16, %v1170_v4  ;;  %v1744_v24 = vadd.f32 %v1173_v16, %v1170_v4  ;;  %v1814_v27 = vmul.f32 %v1173_v16, %v1173_v16 }
 0x15b   :  { %2367 = vst [vmem:[%s3427_s2 + $0x8] sm:$0xff] %v2215_v19  }
 0x15c   :  { %2211 = vst [vmem:[%s3427_s2] sm:$0xff] %v2210_v23   ;;  %v1745_v57 = vadd.f32 %v1744_v24, %v1178_v63  ;;  %v1877_v5 = vadd.f32 %v1814_v27, %v1813_v20  ;;  %v3188_v28 = vpop.f32.mrb[36].mxu0  ;;  %v2460_v31 = vpop.f32.mrb[36].mxu1 }
 0x15d   :  { %v1194_v61 = vadd.f32 %v2460_v31, %v3136_v17  ;;  %v954_v32 = vpop.f32.mrb[37].mxu0  ;;  %v1185_v35 = vpop.f32.mrb[37].mxu1 }
 0x15e   :  { %v1878_v39 = vadd.f32 %v1877_v5, %v1815_v1  ;;  %v1186_v40 = vadd.f32 %v1185_v35, %v3128_v9  ;;  %v1746_v43 = vadd.f32 %v1745_v57, %v1181_v11  ;;  %v3192_v44 = vpop.f32.mrb[38].mxu0  ;;  %v2461_v47 = vpop.f32.mrb[38].mxu1 }
 0x15f   :  { %v1197_v48 = vadd.f32 %v2461_v47, %v3140_v21  ;;  %v957_v51 = vpop.f32.mrb[39].mxu0  ;;  %v1188_v52 = vpop.f32.mrb[39].mxu1  ;;  %v1819_v9 = vmul.f32 %v1194_v61, %v1194_v61 }
 0x160   :  { %v1747_v55 = vadd.f32 %v1746_v43, %v1186_v40  ;;  %v1817_v56 = vmul.f32 %v1186_v40, %v1186_v40  ;;  %v1879_v60 = vadd.f32 %v1878_v39, %v1816_v36  ;;  %v1189_v63 = vadd.f32 %v1188_v52, %v3132_v13 }
 0x161   :  { %v2225_v17 = vpack.c.bf16 %v1197_v48, %v1194_v61  ;;  %v1820_v20 = vmul.f32 %v1197_v48, %v1197_v48 }
 0x162   :  { %v1880_v0 = vadd.f32 %v1879_v60, %v1817_v56  ;;  %v2220_v3 = vpack.c.bf16 %v1189_v63, %v1186_v40  ;;  %v1748_v4 = vadd.f32 %v1747_v55, %v1189_v63  ;;  %v1818_v8 = vmul.f32 %v1189_v63, %v1189_v63 }
 0x163   :  { %2369 = vst [vmem:[%s3427_s2 + $0x18] sm:$0xff] %v2225_v17  }
 0x164   :  { %2368 = vst [vmem:[%s3427_s2 + $0x10] sm:$0xff] %v2220_v3   ;;  %v1749_v21 = vadd.f32 %v1748_v4, %v1194_v61  ;;  %v1881_v11 = vadd.f32 %v1880_v0, %v1818_v8  ;;  %v3202_v12 = vpop.f32.mrb[40].mxu0  ;;  %v2464_v15 = vpop.f32.mrb[40].mxu1 }
 0x165   :  { %v1210_v13 = vadd.f32 %v2464_v15, %v3152_v33  ;;  %v962_v16 = vpop.f32.mrb[41].mxu0  ;;  %v1201_v19 = vpop.f32.mrb[41].mxu1 }
 0x166   :  { %v1882_v23 = vadd.f32 %v1881_v11, %v1819_v9  ;;  %v1202_v24 = vadd.f32 %v1201_v19, %v3144_v25  ;;  %v1750_v27 = vadd.f32 %v1749_v21, %v1197_v48  ;;  %v3206_v1 = vpop.f32.mrb[42].mxu0  ;;  %v2465_v57 = vpop.f32.mrb[42].mxu1 }
 0x167   :  { %v1213_v5 = vadd.f32 %v2465_v57, %v3156_v37  ;;  %v965_v31 = vpop.f32.mrb[43].mxu0  ;;  %v1204_v61 = vpop.f32.mrb[43].mxu1  ;;  %v1823_v25 = vmul.f32 %v1210_v13, %v1210_v13 }
 0x168   :  { %v1751_v32 = vadd.f32 %v1750_v27, %v1202_v24  ;;  %v1821_v35 = vmul.f32 %v1202_v24, %v1202_v24  ;;  %v1883_v36 = vadd.f32 %v1882_v23, %v1820_v20  ;;  %v1205_v39 = vadd.f32 %v1204_v61, %v3148_v29 }
 0x169   :  { %v2235_v33 = vpack.c.bf16 %v1213_v5, %v1210_v13  ;;  %v1824_v63 = vmul.f32 %v1213_v5, %v1213_v5 }
 0x16a   :  { %v1884_v40 = vadd.f32 %v1883_v36, %v1821_v35  ;;  %v2230_v43 = vpack.c.bf16 %v1205_v39, %v1202_v24  ;;  %v1752_v47 = vadd.f32 %v1751_v32, %v1205_v39  ;;  %v1822_v51 = vmul.f32 %v1205_v39, %v1205_v39 }
 0x16b   :  { %2371 = vst [vmem:[%s3427_s2 + $0x28] sm:$0xff] %v2235_v33  }
 0x16c   :  { %2370 = vst [vmem:[%s3427_s2 + $0x20] sm:$0xff] %v2230_v43   ;;  %v1753_v37 = vadd.f32 %v1752_v47, %v1210_v13  ;;  %v1885_v48 = vadd.f32 %v1884_v40, %v1822_v51  ;;  %v968_v52 = vpop.f32.mrb[44].mxu0  ;;  %v2468_v55 = vpop.f32.mrb[44].mxu1 }
 0x16d   :  { %v1226_v29 = vadd.f32 %v2468_v55, %v3168_v49  ;;  %v970_v56 = vpop.f32.mrb[45].mxu0  ;;  %v1217_v60 = vpop.f32.mrb[45].mxu1 }
 0x16e   :  { %v1886_v17 = vadd.f32 %v1885_v48, %v1823_v25  ;;  %v1218_v0 = vadd.f32 %v1217_v60, %v3160_v41  ;;  %v1754_v3 = vadd.f32 %v1753_v37, %v1213_v5  ;;  %v971_v4 = vpop.f32.mrb[46].mxu0  ;;  %v2469_v8 = vpop.f32.mrb[46].mxu1 }
 0x16f   :  { %v1229_v9 = vadd.f32 %v2469_v8, %v3172_v53  ;;  %v973_v21 = vpop.f32.mrb[47].mxu0  ;;  %v1220_v11 = vpop.f32.mrb[47].mxu1  ;;  %v1827_v41 = vmul.f32 %v1226_v29, %v1226_v29 }
 0x170   :  { %v1755_v15 = vadd.f32 %v1754_v3, %v1218_v0  ;;  %v1825_v13 = vmul.f32 %v1218_v0, %v1218_v0  ;;  %v1887_v16 = vadd.f32 %v1886_v17, %v1824_v63  ;;  %v1221_v19 = vadd.f32 %v1220_v11, %v3164_v45 }
 0x171   :  { %v2245_v20 = vpack.c.bf16 %v1229_v9, %v1226_v29  ;;  %v1828_v35 = vmul.f32 %v1229_v9, %v1229_v9 }
 0x172   :  { %v1888_v49 = vadd.f32 %v1887_v16, %v1825_v13  ;;  %v2240_v23 = vpack.c.bf16 %v1221_v19, %v1218_v0  ;;  %v1756_v24 = vadd.f32 %v1755_v15, %v1221_v19  ;;  %v1826_v27 = vmul.f32 %v1221_v19, %v1221_v19 }
 0x173   :  { %2373 = vst [vmem:[%s3427_s2 + $0x38] sm:$0xff] %v2245_v20  }
 0x174   :  { %2372 = vst [vmem:[%s3427_s2 + $0x30] sm:$0xff] %v2240_v23   ;;  %v1757_v53 = vadd.f32 %v1756_v24, %v1226_v29  ;;  %v1889_v57 = vadd.f32 %v1888_v49, %v1826_v27  ;;  %v3226_v5 = vpop.f32.mrb[48].mxu0  ;;  %v2472_v31 = vpop.f32.mrb[48].mxu1 }
 0x175   :  { %v1242_v45 = vadd.f32 %v2472_v31, %v3188_v28  ;;  %v978_v61 = vpop.f32.mrb[49].mxu0  ;;  %v1233_v32 = vpop.f32.mrb[49].mxu1 }
 0x176   :  { %v1890_v36 = vadd.f32 %v1889_v57, %v1827_v41  ;;  %v1234_v39 = vadd.f32 %v1233_v32, %v3176_v59  ;;  %v1758_v33 = vadd.f32 %v1757_v53, %v1229_v9  ;;  %v3230_v40 = vpop.f32.mrb[50].mxu0  ;;  %v2473_v43 = vpop.f32.mrb[50].mxu1 }
 0x177   :  { %v1245_v47 = vadd.f32 %v2473_v43, %v3192_v44  ;;  %v981_v51 = vpop.f32.mrb[51].mxu0  ;;  %v1236_v25 = vpop.f32.mrb[51].mxu1  ;;  %v1831_v59 = vmul.f32 %v1242_v45, %v1242_v45 }
 0x178   :  { %v1759_v37 = vadd.f32 %v1758_v33, %v1234_v39  ;;  %v1829_v48 = vmul.f32 %v1234_v39, %v1234_v39  ;;  %v1891_v55 = vadd.f32 %v1890_v36, %v1828_v35  ;;  %v1237_v29 = vadd.f32 %v1236_v25, %v3179_v7 }
 0x179   :  { %v2255_v28 = vpack.c.bf16 %v1245_v47, %v1242_v45  ;;  %v1832_v11 = vmul.f32 %v1245_v47, %v1245_v47 }
 0x17a   :  { %v1892_v56 = vadd.f32 %v1891_v55, %v1829_v48  ;;  %v2250_v60 = vpack.c.bf16 %v1237_v29, %v1234_v39  ;;  %v1760_v63 = vadd.f32 %v1759_v37, %v1237_v29  ;;  %v1830_v17 = vmul.f32 %v1237_v29, %v1237_v29 }
 0x17b   :  { %2375 = vst [vmem:[%s3427_s2 + $0x48] sm:$0xff] %v2255_v28  }
 0x17c   :  { %2374 = vst [vmem:[%s3427_s2 + $0x40] sm:$0xff] %v2250_v60   ;;  %v1761_v44 = vadd.f32 %v1760_v63, %v1242_v45  ;;  %v1893_v0 = vadd.f32 %v1892_v56, %v1830_v17  ;;  %v984_v3 = vpop.f32.mrb[52].mxu0  ;;  %v2476_v8 = vpop.f32.mrb[52].mxu1 }
 0x17d   :  { %v1258_v9 = vadd.f32 %v2476_v8, %v968_v52  ;;  %v986_v7 = vpop.f32.mrb[53].mxu0  ;;  %v1249_v21 = vpop.f32.mrb[53].mxu1 }
 0x17e   :  { %v1894_v15 = vadd.f32 %v1893_v0, %v1831_v59  ;;  %v1250_v13 = vadd.f32 %v1249_v21, %v3202_v12  ;;  %v1762_v16 = vadd.f32 %v1761_v44, %v1245_v47  ;;  %v987_v19 = vpop.f32.mrb[54].mxu0  ;;  %v2477_v20 = vpop.f32.mrb[54].mxu1 }
 0x17f   :  { %v1261_v49 = vadd.f32 %v2477_v20, %v971_v4  ;;  %v989_v23 = vpop.f32.mrb[55].mxu0  ;;  %v1252_v24 = vpop.f32.mrb[55].mxu1  ;;  %v1835_v12 = vmul.f32 %v1258_v9, %v1258_v9 }
 0x180   :  { %v1763_v27 = vadd.f32 %v1762_v16, %v1250_v13  ;;  %v1833_v41 = vmul.f32 %v1250_v13, %v1250_v13  ;;  %v1895_v53 = vadd.f32 %v1894_v15, %v1832_v11  ;;  %v1253_v57 = vadd.f32 %v1252_v24, %v3206_v1 }
 0x181   :  { %v2265_v31 = vpack.c.bf16 %v1261_v49, %v1258_v9  ;;  %v1836_v47 = vmul.f32 %v1261_v49, %v1261_v49 }
 0x182   :  { %v1896_v45 = vadd.f32 %v1895_v53, %v1833_v41  ;;  %v2260_v52 = vpack.c.bf16 %v1253_v57, %v1250_v13  ;;  %v1764_v61 = vadd.f32 %v1763_v27, %v1253_v57  ;;  %v1834_v32 = vmul.f32 %v1253_v57, %v1253_v57 }
 0x183   :  { %2377 = vst [vmem:[%s3427_s2 + $0x58] sm:$0xff] %v2265_v31  }
 0x184   :  { %2376 = vst [vmem:[%s3427_s2 + $0x50] sm:$0xff] %v2260_v52   ;;  %v1765_v4 = vadd.f32 %v1764_v61, %v1258_v9  ;;  %v1897_v35 = vadd.f32 %v1896_v45, %v1834_v32  ;;  %v992_v36 = vpop.f32.mrb[56].mxu0  ;;  %v2480_v39 = vpop.f32.mrb[56].mxu1 }
 0x185   :  { %v1274_v33 = vadd.f32 %v2480_v39, %v984_v3  ;;  %v994_v1 = vpop.f32.mrb[57].mxu0  ;;  %v1265_v43 = vpop.f32.mrb[57].mxu1 }
 0x186   :  { %v1898_v51 = vadd.f32 %v1897_v35, %v1835_v12  ;;  %v1266_v25 = vadd.f32 %v1265_v43, %v3226_v5  ;;  %v1766_v37 = vadd.f32 %v1765_v4, %v1261_v49  ;;  %v995_v48 = vpop.f32.mrb[58].mxu0  ;;  %v2481_v55 = vpop.f32.mrb[58].mxu1 }
 0x187   :  { %v1277_v29 = vadd.f32 %v2481_v55, %v987_v19  ;;  %v997_v28 = vpop.f32.mrb[59].mxu0  ;;  %v1268_v56 = vpop.f32.mrb[59].mxu1  ;;  %v1839_v5 = vmul.f32 %v1274_v33, %v1274_v33 }
 0x188   :  { %v1767_v60 = vadd.f32 %v1766_v37, %v1266_v25  ;;  %v1837_v63 = vmul.f32 %v1266_v25, %v1266_v25  ;;  %v1899_v17 = vadd.f32 %v1898_v51, %v1836_v47  ;;  %v1269_v59 = vadd.f32 %v1268_v56, %v3230_v40 }
 0x189   :  { %v2275_v44 = vpack.c.bf16 %v1277_v29, %v1274_v33  ;;  %v1840_v19 = vmul.f32 %v1277_v29, %v1277_v29 }
 0x18a   :  { %v1900_v0 = vadd.f32 %v1899_v17, %v1837_v63  ;;  %v2270_v3 = vpack.c.bf16 %v1269_v59, %v1266_v25  ;;  %v1768_v8 = vadd.f32 %v1767_v60, %v1269_v59  ;;  %v1838_v9 = vmul.f32 %v1269_v59, %v1269_v59 }
 0x18b   :  { %2379 = vst [vmem:[%s3427_s2 + $0x68] sm:$0xff] %v2275_v44  }
 0x18c   :  { %2378 = vst [vmem:[%s3427_s2 + $0x60] sm:$0xff] %v2270_v3   ;;  %v1769_v7 = vadd.f32 %v1768_v8, %v1274_v33  ;;  %v1901_v21 = vadd.f32 %v1900_v0, %v1838_v9  ;;  %v1000_v11 = vpop.f32.mrb[60].mxu0  ;;  %v2484_v15 = vpop.f32.mrb[60].mxu1 }
 0x18d   :  { %v1290_v13 = vadd.f32 %v2484_v15, %v1000_v11  ;;  %v1002_v40 = vpop.f32.mrb[61].mxu0  ;;  %v1281_v16 = vpop.f32.mrb[61].mxu1 }
 0x18e   :  { %v1902_v20 = vadd.f32 %v1901_v21, %v1839_v5  ;;  %v1282_v49 = vadd.f32 %v1281_v16, %v992_v36  ;;  %v1770_v23 = vadd.f32 %v1769_v7, %v1277_v29  ;;  %v1003_v24 = vpop.f32.mrb[62].mxu0  ;;  %v2485_v27 = vpop.f32.mrb[62].mxu1 }
 0x18f   :  { %v1293_v41 = vadd.f32 %v2485_v27, %v1003_v24  ;;  %v1005_v53 = vpop.f32.mrb[63].mxu0  ;;  %v1284_v57 = vpop.f32.mrb[63].mxu1  ;;  %v1843_v36 = vmul.f32 %v1290_v13, %v1290_v13 }
 0x190   :  { %v1771_v31 = vadd.f32 %v1770_v23, %v1282_v49  ;;  %v1841_v45 = vmul.f32 %v1282_v49, %v1282_v49  ;;  %v1903_v52 = vadd.f32 %v1902_v20, %v1840_v19  ;;  %v1285_v61 = vadd.f32 %v1284_v57, %v995_v48 }
 0x191   :  { %v2285_v32 = vpack.c.bf16 %v1293_v41, %v1290_v13  ;;  %v1844_v37 = vmul.f32 %v1293_v41, %v1293_v41 }
 0x192   :  { %v1904_v12 = vadd.f32 %v1903_v52, %v1841_v45  ;;  %v2280_v4 = vpack.c.bf16 %v1285_v61, %v1282_v49  ;;  %v1772_v35 = vadd.f32 %v1771_v31, %v1285_v61  ;;  %v1842_v39 = vmul.f32 %v1285_v61, %v1285_v61 }
 0x193   :  { %2381 = vst [vmem:[%s3427_s2 + $0x78] sm:$0xff] %v2285_v32  }
 0x194   :  { %2380 = vst [vmem:[%s3427_s2 + $0x70] sm:$0xff] %v2280_v4   ;;  %v1773_v33 = vadd.f32 %v1772_v35, %v1290_v13  ;;  %v1905_v1 = vadd.f32 %v1904_v12, %v1842_v39  ;;  %v1008_v43 = vpop.f32.mrb[64].mxu0  ;;  %v2488_v47 = vpop.f32.mrb[64].mxu1 }
 0x195   :  { %v1010_v51 = vpop.f32.mrb[65].mxu0  ;;  %v1297_v25 = vpop.f32.mrb[65].mxu1 }
 0x196   :  { %v1906_v48 = vadd.f32 %v1905_v1, %v1843_v36  ;;  %v1298_v55 = vadd.f32 %v1297_v25, %v1008_v43  ;;  %v1774_v29 = vadd.f32 %v1773_v33, %v1293_v41  ;;  %v1011_v28 = vpop.f32.mrb[66].mxu0  ;;  %v2489_v56 = vpop.f32.mrb[66].mxu1 }
 0x197   :  { %v1013_v60 = vpop.f32.mrb[67].mxu0  ;;  %v1300_v63 = vpop.f32.mrb[67].mxu1 }
 0x198   :  { %v1775_v17 = vadd.f32 %v1774_v29, %v1298_v55  ;;  %v1845_v59 = vmul.f32 %v1298_v55, %v1298_v55  ;;  %v1907_v44 = vadd.f32 %v1906_v48, %v1844_v37  ;;  %v1301_v0 = vadd.f32 %v1300_v63, %v1011_v28 }
 0x19a   :  { %v1908_v3 = vadd.f32 %v1907_v44, %v1845_v59  ;;  %v2290_v8 = vpack.c.bf16 %v1301_v0, %v1298_v55  ;;  %v1776_v9 = vadd.f32 %v1775_v17, %v1301_v0  ;;  %v1846_v5 = vmul.f32 %v1301_v0, %v1301_v0 }
 0x19c   :  { %2382 = vst [vmem:[%s3427_s2 + $0x80] sm:$0xff] %v2290_v8   ;;  %v1909_v7 = vadd.f32 %v1908_v3, %v1846_v5  ;;  %v1016_v21 = vpop.f32.mrb[68].mxu0  ;;  %v2492_v11 = vpop.f32.mrb[68].mxu1 }
 0x19d   :  { %v1306_v15 = vadd.f32 %v2488_v47, %v1016_v21  ;;  %v1018_v13 = vpop.f32.mrb[69].mxu0  ;;  %v1313_v40 = vpop.f32.mrb[69].mxu1 }
 0x19e   :  { %v1019_v16 = vpop.f32.mrb[70].mxu0  ;;  %v2493_v19 = vpop.f32.mrb[70].mxu1 }
 0x19f   :  { %v1777_v20 = vadd.f32 %v1776_v9, %v1306_v15  ;;  %v1847_v49 = vmul.f32 %v1306_v15, %v1306_v15  ;;  %v1309_v23 = vadd.f32 %v2489_v56, %v1019_v16  ;;  %v1021_v24 = vpop.f32.mrb[71].mxu0  ;;  %v1316_v27 = vpop.f32.mrb[71].mxu1 }
 0x1a1   :  { %v1910_v41 = vadd.f32 %v1909_v7, %v1847_v49  ;;  %v2295_v53 = vpack.c.bf16 %v1309_v23, %v1306_v15  ;;  %v1778_v57 = vadd.f32 %v1777_v20, %v1309_v23  ;;  %v1848_v31 = vmul.f32 %v1309_v23, %v1309_v23 }
 0x1a3   :  { %2383 = vst [vmem:[%s3427_s2 + $0x88] sm:$0xff] %v2295_v53   ;;  %v1911_v45 = vadd.f32 %v1910_v41, %v1848_v31 }
 0x1a4   :  { %v1024_v52 = vpop.f32.mrb[72].mxu0  ;;  %v3268_v61 = vpop.f32.mrb[72].mxu1 }
 0x1a5   :  { %v1314_v32 = vadd.f32 %v1313_v40, %v1024_v52  ;;  %v1026_v12 = vpop.f32.mrb[73].mxu0  ;;  %v1329_v4 = vpop.f32.mrb[73].mxu1 }
 0x1a6   :  { %v1027_v35 = vpop.f32.mrb[74].mxu0  ;;  %v3270_v39 = vpop.f32.mrb[74].mxu1 }
 0x1a7   :  { %v1779_v36 = vadd.f32 %v1778_v57, %v1314_v32  ;;  %v1849_v33 = vmul.f32 %v1314_v32, %v1314_v32  ;;  %v1317_v1 = vadd.f32 %v1316_v27, %v1027_v35  ;;  %v1029_v43 = vpop.f32.mrb[75].mxu0  ;;  %v1332_v47 = vpop.f32.mrb[75].mxu1 }
 0x1a9   :  { %v1912_v51 = vadd.f32 %v1911_v45, %v1849_v33  ;;  %v2300_v25 = vpack.c.bf16 %v1317_v1, %v1314_v32  ;;  %v1780_v37 = vadd.f32 %v1779_v36, %v1317_v1  ;;  %v1850_v48 = vmul.f32 %v1317_v1, %v1317_v1 }
 0x1ab   :  { %2384 = vst [vmem:[%s3427_s2 + $0x90] sm:$0xff] %v2300_v25   ;;  %v1913_v55 = vadd.f32 %v1912_v51, %v1850_v48 }
 0x1ac   :  { %v1032_v29 = vpop.f32.mrb[76].mxu0  ;;  %v3275_v28 = vpop.f32.mrb[76].mxu1 }
 0x1ad   :  { %v1322_v56 = vadd.f32 %v2492_v11, %v1032_v29  ;;  %v1034_v60 = vpop.f32.mrb[77].mxu0  ;;  %v3277_v63 = vpop.f32.mrb[77].mxu1 }
 0x1ae   :  { %v1035_v17 = vpop.f32.mrb[78].mxu0  ;;  %v3279_v59 = vpop.f32.mrb[78].mxu1 }
 0x1af   :  { %v1781_v44 = vadd.f32 %v1780_v37, %v1322_v56  ;;  %v1851_v0 = vmul.f32 %v1322_v56, %v1322_v56  ;;  %v1325_v3 = vadd.f32 %v2493_v19, %v1035_v17  ;;  %v1037_v8 = vpop.f32.mrb[79].mxu0  ;;  %v3281_v9 = vpop.f32.mrb[79].mxu1 }
 0x1b1   :  { %v1914_v5 = vadd.f32 %v1913_v55, %v1851_v0  ;;  %v2305_v7 = vpack.c.bf16 %v1325_v3, %v1322_v56  ;;  %v1782_v21 = vadd.f32 %v1781_v44, %v1325_v3  ;;  %v1852_v15 = vmul.f32 %v1325_v3, %v1325_v3 }
 0x1b3   :  { %2385 = vst [vmem:[%s3427_s2 + $0x98] sm:$0xff] %v2305_v7   ;;  %v1915_v11 = vadd.f32 %v1914_v5, %v1852_v15 }
 0x1b4   :  { %v1040_v13 = vpop.f32.mrb[80].mxu0  ;;  %v2504_v40 = vpop.f32.mrb[80].mxu1 }
 0x1b5   :  { %v1330_v16 = vadd.f32 %v1329_v4, %v1040_v13  ;;  %v3287_v20 = vadd.f32 %v2504_v40, %v3124_v2  ;;  %v1042_v49 = vpop.f32.mrb[81].mxu0  ;;  %v1361_v19 = vpop.f32.mrb[81].mxu1 }
 0x1b6   :  { %v3290_v23 = vadd.f32 %v1361_v19, %v3118_v58  ;;  %v1043_v24 = vpop.f32.mrb[82].mxu0  ;;  %v2505_v27 = vpop.f32.mrb[82].mxu1 }
 0x1b7   :  { %v1783_v41 = vadd.f32 %v1782_v21, %v1330_v16  ;;  %v1853_v53 = vmul.f32 %v1330_v16, %v1330_v16  ;;  %v1333_v57 = vadd.f32 %v1332_v47, %v1043_v24  ;;  %v1045_v31 = vpop.f32.mrb[83].mxu0  ;;  %v1364_v45 = vpop.f32.mrb[83].mxu1  ;;  %v3293_v52 = vadd.f32 %v2505_v27, %v3126_v6 }
 0x1b8   :  { %v3296_v32 = vadd.f32 %v1364_v45, %v3122_v62 }
 0x1b9   :  { %v1916_v2 = vadd.f32 %v1915_v11, %v1853_v53  ;;  %v2310_v12 = vpack.c.bf16 %v1333_v57, %v1330_v16  ;;  %v1784_v4 = vadd.f32 %v1783_v41, %v1333_v57  ;;  %v1854_v35 = vmul.f32 %v1333_v57, %v1333_v57 }
 0x1ba   :  { %v2335_v58 = vpack.c.bf16 %v3293_v52, %v3287_v20  ;;  %v2330_v36 = vpack.c.bf16 %v3296_v32, %v3290_v23 }
 0x1bb   :  { %2386 = vst [vmem:[%s3427_s2 + $0xa0] sm:$0xff] %v2310_v12   ;;  %v1917_v33 = vadd.f32 %v1916_v2, %v1854_v35 }
 0x1bc   :  { %2391 = vst [vmem:[%s3427_s2 + $0xc8] sm:$0xff] %v2335_v58   ;;  %2390 = vst [vmem:[%s3427_s2 + $0xc0] sm:$0xff] %v2330_v36   ;;  %v1048_v62 = vpop.f32.mrb[84].mxu0  ;;  %v2508_v6 = vpop.f32.mrb[84].mxu1 }
 0x1bd   :  { %v1338_v1 = vadd.f32 %v3268_v61, %v1048_v62  ;;  %v3313_v43 = vadd.f32 %v2508_v6, %v3138_v18  ;;  %v1050_v47 = vpop.f32.mrb[85].mxu0  ;;  %v1377_v51 = vpop.f32.mrb[85].mxu1 }
 0x1be   :  { %v3316_v25 = vadd.f32 %v1377_v51, %v3130_v10  ;;  %v1051_v37 = vpop.f32.mrb[86].mxu0  ;;  %v2509_v48 = vpop.f32.mrb[86].mxu1 }
 0x1bf   :  { %v1785_v55 = vadd.f32 %v1784_v4, %v1338_v1  ;;  %v1855_v29 = vmul.f32 %v1338_v1, %v1338_v1  ;;  %v1341_v56 = vadd.f32 %v3270_v39, %v1051_v37  ;;  %v1053_v60 = vpop.f32.mrb[87].mxu0  ;;  %v1380_v17 = vpop.f32.mrb[87].mxu1  ;;  %v3320_v44 = vadd.f32 %v2509_v48, %v3142_v22 }
 0x1c0   :  { %v3323_v61 = vadd.f32 %v1380_v17, %v3134_v14 }
 0x1c1   :  { %v1918_v18 = vadd.f32 %v1917_v33, %v1855_v29  ;;  %v2315_v0 = vpack.c.bf16 %v1341_v56, %v1338_v1  ;;  %v1786_v3 = vadd.f32 %v1785_v55, %v1341_v56  ;;  %v1856_v8 = vmul.f32 %v1341_v56, %v1341_v56 }
 0x1c2   :  { %v2345_v10 = vpack.c.bf16 %v3320_v44, %v3313_v43  ;;  %v2340_v5 = vpack.c.bf16 %v3323_v61, %v3316_v25 }
 0x1c3   :  { %2387 = vst [vmem:[%s3427_s2 + $0xa8] sm:$0xff] %v2315_v0   ;;  %v1919_v39 = vadd.f32 %v1918_v18, %v1856_v8 }
 0x1c4   :  { %2393 = vst [vmem:[%s3427_s2 + $0xd8] sm:$0xff] %v2345_v10   ;;  %2392 = vst [vmem:[%s3427_s2 + $0xd0] sm:$0xff] %v2340_v5   ;;  %v1056_v14 = vpop.f32.mrb[88].mxu0  ;;  %v2512_v22 = vpop.f32.mrb[88].mxu1  ;;  %v1864_v10 = vmul.f32 %v3293_v52, %v3293_v52 }
 0x1c5   :  { %v1346_v7 = vadd.f32 %v3277_v63, %v1056_v14  ;;  %v3340_v21 = vadd.f32 %v2512_v22, %v3154_v34  ;;  %v1058_v15 = vpop.f32.mrb[89].mxu0  ;;  %v1393_v11 = vpop.f32.mrb[89].mxu1  ;;  %v1865_v14 = vmul.f32 %v3316_v25, %v3316_v25 }
 0x1c6   :  { %v3343_v13 = vadd.f32 %v1393_v11, %v3146_v26  ;;  %v1059_v40 = vpop.f32.mrb[90].mxu0  ;;  %v2513_v16 = vpop.f32.mrb[90].mxu1 }
 0x1c7   :  { %v1787_v49 = vadd.f32 %v1786_v3, %v1346_v7  ;;  %v1857_v19 = vmul.f32 %v1346_v7, %v1346_v7  ;;  %v1349_v24 = vadd.f32 %v3281_v9, %v1059_v40  ;;  %v1061_v27 = vpop.f32.mrb[91].mxu0  ;;  %v1396_v41 = vpop.f32.mrb[91].mxu1  ;;  %v3347_v53 = vadd.f32 %v2513_v16, %v3158_v38 }
 0x1c8   :  { %v3350_v63 = vadd.f32 %v1396_v41, %v3150_v30  ;;  %v1863_v3 = vmul.f32 %v3287_v20, %v3287_v20 }
 0x1c9   :  { %v1920_v34 = vadd.f32 %v1919_v39, %v1857_v19  ;;  %v2320_v57 = vpack.c.bf16 %v1349_v24, %v1346_v7  ;;  %v1788_v31 = vadd.f32 %v1787_v49, %v1349_v24  ;;  %v1858_v45 = vmul.f32 %v1349_v24, %v1349_v24 }
 0x1ca   :  { %v2355_v26 = vpack.c.bf16 %v3347_v53, %v3340_v21  ;;  %v2350_v2 = vpack.c.bf16 %v3350_v63, %v3343_v13 }
 0x1cb   :  { %2388 = vst [vmem:[%s3427_s2 + $0xb0] sm:$0xff] %v2320_v57   ;;  %v1921_v9 = vadd.f32 %v1920_v34, %v1858_v45 }
 0x1cc   :  { %2395 = vst [vmem:[%s3427_s2 + $0xe8] sm:$0xff] %v2355_v26   ;;  %2394 = vst [vmem:[%s3427_s2 + $0xe0] sm:$0xff] %v2350_v2   ;;  %v1064_v30 = vpop.f32.mrb[92].mxu0  ;;  %v2516_v38 = vpop.f32.mrb[92].mxu1 }
 0x1cd   :  { %v1354_v12 = vadd.f32 %v3275_v28, %v1064_v30  ;;  %v3367_v4 = vadd.f32 %v2516_v38, %v3170_v50  ;;  %v1066_v35 = vpop.f32.mrb[93].mxu0  ;;  %v1409_v58 = vpop.f32.mrb[93].mxu1 }
 0x1ce   :  { %v1410_v36 = vadd.f32 %v1409_v58, %v3162_v42  ;;  %v1067_v33 = vpop.f32.mrb[94].mxu0  ;;  %v2517_v62 = vpop.f32.mrb[94].mxu1  ;;  %v1861_v42 = vmul.f32 %v3290_v23, %v3290_v23 }
 0x1cf   :  { %v1789_v6 = vadd.f32 %v1788_v31, %v1354_v12  ;;  %v1859_v1 = vmul.f32 %v1354_v12, %v1354_v12  ;;  %v1357_v47 = vadd.f32 %v3279_v59, %v1067_v33  ;;  %v1069_v51 = vpop.f32.mrb[95].mxu0  ;;  %v1412_v37 = vpop.f32.mrb[95].mxu1  ;;  %v1421_v48 = vadd.f32 %v2517_v62, %v3174_v54 }
 0x1d0   :  { %v1413_v55 = vadd.f32 %v1412_v37, %v3166_v46  ;;  %v1862_v46 = vmul.f32 %v3296_v32, %v3296_v32 }
 0x1d1   :  { %v1922_v28 = vadd.f32 %v1921_v9, %v1859_v1  ;;  %v2325_v29 = vpack.c.bf16 %v1357_v47, %v1354_v12  ;;  %v1790_v50 = vadd.f32 %v1789_v6, %v1357_v47  ;;  %v1860_v56 = vmul.f32 %v1357_v47, %v1357_v47 }
 0x1d2   :  { %v2365_v60 = vpack.c.bf16 %v1421_v48, %v3367_v4  ;;  %v2360_v17 = vpack.c.bf16 %v1413_v55, %v1410_v36  ;;  %v1874_v38 = vmul.f32 %v1413_v55, %v1413_v55 }
 0x1d3   :  { %2389 = vst [vmem:[%s3427_s2 + $0xb8] sm:$0xff] %v2325_v29   ;;  %v1791_v59 = vadd.f32 %v1790_v50, %v3290_v23  ;;  %v1923_v18 = vadd.f32 %v1922_v28, %v1860_v56 }
 0x1d4   :  { %2397 = vst [vmem:[%s3427_s2 + $0xf8] sm:$0xff] %v2365_v60   ;;  %2396 = vst [vmem:[%s3427_s2 + $0xf0] sm:$0xff] %v2360_v17  }
 0x1d5   :  { %v1792_v54 = vadd.f32 %v1791_v59, %v3296_v32  ;;  %v1924_v0 = vadd.f32 %v1923_v18, %v1861_v42  ;;  %v1866_v32 = vmul.f32 %v3323_v61, %v3323_v61 }
 0x1d7   :  { %v1793_v23 = vadd.f32 %v1792_v54, %v3287_v20  ;;  %v1925_v8 = vadd.f32 %v1924_v0, %v1862_v46  ;;  %v1867_v20 = vmul.f32 %v3313_v43, %v3313_v43 }
 0x1d9   :  { %v1794_v5 = vadd.f32 %v1793_v23, %v3293_v52  ;;  %v1926_v39 = vadd.f32 %v1925_v8, %v1863_v3  ;;  %v1868_v52 = vmul.f32 %v3320_v44, %v3320_v44 }
 0x1db   :  { %v1795_v22 = vadd.f32 %v1794_v5, %v3316_v25  ;;  %v1927_v7 = vadd.f32 %v1926_v39, %v1864_v10  ;;  %v1869_v25 = vmul.f32 %v3343_v13, %v3343_v13 }
 0x1dd   :  { %v1796_v15 = vadd.f32 %v1795_v22, %v3323_v61  ;;  %v1928_v11 = vadd.f32 %v1927_v7, %v1865_v14  ;;  %v1870_v61 = vmul.f32 %v3350_v63, %v3350_v63 }
 0x1df   :  { %v1929_v40 = vadd.f32 %v1928_v11, %v1866_v32  ;;  %v1797_v16 = vadd.f32 %v1796_v15, %v3313_v43  ;;  %v1871_v43 = vmul.f32 %v3340_v21, %v3340_v21 }
 0x1e1   :  { %v1798_v49 = vadd.f32 %v1797_v16, %v3320_v44  ;;  %v1930_v19 = vadd.f32 %v1929_v40, %v1867_v20  ;;  %v1872_v44 = vmul.f32 %v3347_v53, %v3347_v53 }
 0x1e3   :  { %v1799_v24 = vadd.f32 %v1798_v49, %v3343_v13  ;;  %v1931_v27 = vadd.f32 %v1930_v19, %v1868_v52  ;;  %v1873_v13 = vmul.f32 %v1410_v36, %v1410_v36 }
 0x1e5   :  { %v1800_v41 = vadd.f32 %v1799_v24, %v3350_v63  ;;  %v1932_v34 = vadd.f32 %v1931_v27, %v1869_v25  ;;  %v1875_v63 = vmul.f32 %v3367_v4, %v3367_v4 }
 0x1e7   :  { %v1801_v57 = vadd.f32 %v1800_v41, %v3340_v21  ;;  %v1933_v31 = vadd.f32 %v1932_v34, %v1870_v61  ;;  %v1876_v21 = vmul.f32 %v1421_v48, %v1421_v48 }
 0x1e9   :  { %v1802_v45 = vadd.f32 %v1801_v57, %v3347_v53  ;;  %v1934_v26 = vadd.f32 %v1933_v31, %v1871_v43 }
 0x1eb   :  { %v1803_v2 = vadd.f32 %v1802_v45, %v1410_v36  ;;  %v1935_v9 = vadd.f32 %v1934_v26, %v1872_v44 }
 0x1ed   :  { %v1804_v30 = vadd.f32 %v1803_v2, %v1413_v55  ;;  %v1936_v12 = vadd.f32 %v1935_v9, %v1873_v13 }
 0x1ef   :  { %v1805_v35 = vadd.f32 %v1804_v30, %v3367_v4  ;;  %v1937_v58 = vadd.f32 %v1936_v12, %v1874_v38 }
 0x1f1   :  { %v1806_v33 = vadd.f32 %v1805_v35, %v1421_v48  ;;  %v1938_v62 = vadd.f32 %v1937_v58, %v1875_v63 }
 0x1f3   :  { %v1807_v6 = vrot.slane %v1806_v33, 4  ;;  %v1939_v1 = vadd.f32 %v1938_v62, %v1876_v21 }
 0x1f5   :  { %v1808_v47 = vadd.f32 %v1807_v6, %v1806_v33  ;;  %v1940_v53 = vrot.slane %v1939_v1, 4 }
 0x1f7   :  { %v1809_v51 = vrot.slane %v1808_v47, 2  ;;  %v1941_v37 = vadd.f32 %v1940_v53, %v1939_v1 }
 0x1f9   :  { %v1810_v36 = vadd.f32 %v1809_v51, %v1808_v47  ;;  %v1942_v28 = vrot.slane %v1941_v37, 2 }
 0x1fb   :  { %v1811_v29 = vrot.slane %v1810_v36, 1  ;;  %v1943_v55 = vadd.f32 %v1942_v28, %v1941_v37 }
 0x1fd   :  { %v1944_v50 = vrot.slane %v1943_v55, 1  ;;  %v1812_v56 = vadd.f32 %v1811_v29, %v1810_v36 }
 0x1ff   :  { %v1945_v60 = vadd.f32 %v1944_v50, %v1943_v55 }
 0x201   :  { %v1947_v4 = vsel %vm1946_vm0, %v1812_v56, %v1945_v60 }
 0x202   :  { %v1949_v17 = vsel %vm1948_vm1, %v1947_v4, 0.0 }
 0x203   :  { %1950 = vst [vmem:[%s3428_s3] sm:$0xff] %v1949_v17 }

// kernel: basic_block_forward.7
= control target key start
LH: loop header
LB: loop body
LE: loop exit
PB: predicated region body
PF: predicated region fallthrough
CT: control target
= control target key end

     0   :  { %s1341_s0 = inlined_call_operand.vmem [shape: bf16[512,128], index: 0, kind: input, shape index: {}]   ;;  %s1342_s1 = inlined_call_operand.vmem [shape: f32[1,128], index: 1, kind: input, shape index: {}]   ;;  %s1343_s2 = inlined_call_operand.vmem [shape: f32[1,128], index: 2, kind: input, shape index: {}]   ;;  %s1344_s3 = inlined_call_operand.vmem [shape: bf16[512,128], index: 3, kind: input, shape index: {}]   ;;  %s1345_s4 = inlined_call_operand.hbm [shape: f32[512,128], index: 4, kind: output, shape index: {}]  }
   0x1   :  { %v627_v0 = vld [vmem:[%s1341_s0] sm:$0xff]   ;;  %v882_v5 = vld [vmem:[%s1341_s0 + $0x8] sm:$0xff]   ;;  %v883_v12 = vld [vmem:[%s1341_s0 + $0x10] sm:$0xff]  }
   0x2   :  { %v1005_v1 = vld [vmem:[%s1342_s1] ss:$0 sm:$0xff]  ;;  %v628_v2 = vunpack.c.l.bf16 %v627_v0  ;;  %v629_v4 = vunpack.c.h.bf16 %v627_v0  ;;  %v913_v6 = vld [vmem:[%s1344_s3 + $0x8] sm:$0xff]   ;;  %v632_v10 = vunpack.c.l.bf16 %v882_v5  ;;  %v914_v13 = vld [vmem:[%s1344_s3 + $0x10] sm:$0xff]   ;;  %v633_v16 = vunpack.c.h.bf16 %v882_v5 }
   0x3   :  { %v755_v3 = vld [vmem:[%s1344_s3] sm:$0xff]   ;;  %v760_v11 = vunpack.c.l.bf16 %v913_v6  ;;  %v761_v17 = vunpack.c.h.bf16 %v913_v6  ;;  %v884_v18 = vld [vmem:[%s1341_s0 + $0x18] sm:$0xff]   ;;  %v636_v20 = vunpack.c.l.bf16 %v883_v12  ;;  %v764_v21 = vunpack.c.l.bf16 %v914_v13  ;;  %v886_v54 = vld [vmem:[%s1341_s0 + $0x28] sm:$0xff]  }
   0x4   :  { %v1019_v7 = vld [vmem:[%s1343_s2] ss:$0 sm:$0xff]  ;;  %v756_v8 = vunpack.c.l.bf16 %v755_v3  ;;  %v757_v9 = vunpack.c.h.bf16 %v755_v3  ;;  %v153_v14 = vmul.f32 %v628_v2, %v1005_v1  ;;  %v154_v15 = vmul.f32 %v629_v4, %v1005_v1  ;;  %v915_v23 = vld [vmem:[%s1344_s3 + $0x18] sm:$0xff]   ;;  %v917_v55 = vld [vmem:[%s1344_s3 + $0x28] sm:$0xff]  }
   0x5   :  { %v155_v19 = vmul.f32 %v632_v10, %v1005_v1  ;;  %v637_v22 = vunpack.c.h.bf16 %v883_v12  ;;  %v156_v26 = vmul.f32 %v633_v16, %v1005_v1  ;;  %v765_v27 = vunpack.c.h.bf16 %v914_v13  ;;  %v885_v40 = vld [vmem:[%s1341_s0 + $0x20] sm:$0xff]   ;;  %v887_v0 = vld [vmem:[%s1341_s0 + $0x30] sm:$0xff]   ;;  %v888_v16 = vld [vmem:[%s1341_s0 + $0x38] sm:$0xff]  }
   0x6   :  { %v224_v24 = vadd.f32 %v1019_v7, %v153_v14  ;;  %v225_v25 = vadd.f32 %v1019_v7, %v154_v15  ;;  %v157_v29 = vmul.f32 %v636_v20, %v1005_v1  ;;  %v640_v31 = vunpack.c.l.bf16 %v884_v18  ;;  %v916_v45 = vld [vmem:[%s1344_s3 + $0x20] sm:$0xff]   ;;  %v918_v2 = vld [vmem:[%s1344_s3 + $0x30] sm:$0xff]  }
   0x7   :  { %v226_v28 = vadd.f32 %v1019_v7, %v155_v19  ;;  %v158_v30 = vmul.f32 %v637_v22, %v1005_v1  ;;  %v227_v34 = vadd.f32 %v1019_v7, %v156_v26  ;;  %v768_v35 = vunpack.c.l.bf16 %v915_v23 }
   0x8   :  { %v416_v32 = vadd.f32 %v756_v8, %v224_v24  ;;  %v417_v33 = vadd.f32 %v757_v9, %v225_v25  ;;  %v228_v37 = vadd.f32 %v1019_v7, %v157_v29  ;;  %v159_v39 = vmul.f32 %v640_v31, %v1005_v1 }
   0x9   :  { %v418_v36 = vadd.f32 %v760_v11, %v226_v28  ;;  %v229_v38 = vadd.f32 %v1019_v7, %v158_v30  ;;  %v419_v43 = vadd.f32 %v761_v17, %v227_v34  ;;  %v641_v44 = vunpack.c.h.bf16 %v884_v18  ;;  %v889_v34 = vld [vmem:[%s1341_s0 + $0x40] sm:$0xff]  }
   0xa   :  { %v480_v41 = vmax.f32 %v416_v32, 0.0  ;;  %v481_v42 = vmax.f32 %v417_v33, 0.0  ;;  %v420_v47 = vadd.f32 %v764_v21, %v228_v37  ;;  %v230_v49 = vadd.f32 %v1019_v7, %v159_v39  ;;  %v919_v21 = vld [vmem:[%s1344_s3 + $0x38] sm:$0xff]   ;;  %v920_v39 = vld [vmem:[%s1344_s3 + $0x40] sm:$0xff]  }
   0xb   :  { %v482_v46 = vmax.f32 %v418_v36, 0.0  ;;  %v421_v48 = vadd.f32 %v765_v27, %v229_v38  ;;  %v483_v50 = vmax.f32 %v419_v43, 0.0  ;;  %v160_v51 = vmul.f32 %v641_v44, %v1005_v1 }
   0xc   :  { %544 = vst [vmem:[#allocation2] sm:$0xff] %v480_v41  ;;  %545 = vst [vmem:[#allocation2 + $0x8] sm:$0xff] %v481_v42  ;;  %v769_v52 = vunpack.c.h.bf16 %v915_v23  ;;  %v644_v53 = vunpack.c.l.bf16 %v885_v40  ;;  %v484_v56 = vmax.f32 %v420_v47, 0.0  ;;  %v422_v58 = vadd.f32 %v768_v35, %v230_v49 }
   0xd   :  { %546 = vst [vmem:[#allocation2 + $0x10] sm:$0xff] %v482_v46  ;;  %v485_v57 = vmax.f32 %v421_v48, 0.0  ;;  %v772_v59 = vunpack.c.l.bf16 %v916_v45  ;;  %547 = vst [vmem:[#allocation2 + $0x18] sm:$0xff] %v483_v50  ;;  %v231_v60 = vadd.f32 %v1019_v7, %v160_v51  ;;  %v645_v62 = vunpack.c.h.bf16 %v885_v40 }
   0xe   :  { %v161_v61 = vmul.f32 %v644_v53, %v1005_v1  ;;  %v773_v63 = vunpack.c.h.bf16 %v916_v45  ;;  %548 = vst [vmem:[#allocation2 + $0x20] sm:$0xff] %v484_v56  ;;  %v486_v3 = vmax.f32 %v422_v58, 0.0  ;;  %v648_v4 = vunpack.c.l.bf16 %v886_v54 }
   0xf   :  { %549 = vst [vmem:[#allocation2 + $0x28] sm:$0xff] %v485_v57  ;;  %v776_v5 = vunpack.c.l.bf16 %v917_v55  ;;  %v649_v6 = vunpack.c.h.bf16 %v886_v54  ;;  %v423_v8 = vadd.f32 %v769_v52, %v231_v60  ;;  %v162_v10 = vmul.f32 %v645_v62, %v1005_v1 }
  0x10   :  { %v232_v9 = vadd.f32 %v1019_v7, %v161_v61  ;;  %v777_v11 = vunpack.c.h.bf16 %v917_v55  ;;  %550 = vst [vmem:[#allocation2 + $0x30] sm:$0xff] %v486_v3  ;;  %v163_v12 = vmul.f32 %v648_v4, %v1005_v1  ;;  %v652_v14 = vunpack.c.l.bf16 %v887_v0 }
  0x11   :  { %v164_v13 = vmul.f32 %v649_v6, %v1005_v1  ;;  %v780_v15 = vunpack.c.l.bf16 %v918_v2  ;;  %v487_v17 = vmax.f32 %v423_v8, 0.0  ;;  %v233_v19 = vadd.f32 %v1019_v7, %v162_v10 }
  0x12   :  { %v424_v18 = vadd.f32 %v772_v59, %v232_v9  ;;  %v653_v20 = vunpack.c.h.bf16 %v887_v0  ;;  %v234_v22 = vadd.f32 %v1019_v7, %v163_v12  ;;  %v165_v24 = vmul.f32 %v652_v14, %v1005_v1 }
  0x13   :  { %v235_v23 = vadd.f32 %v1019_v7, %v164_v13  ;;  %v781_v25 = vunpack.c.h.bf16 %v918_v2  ;;  %551 = vst [vmem:[#allocation2 + $0x38] sm:$0xff] %v487_v17  ;;  %v425_v27 = vadd.f32 %v773_v63, %v233_v19  ;;  %v656_v29 = vunpack.c.l.bf16 %v888_v16 }
  0x14   :  { %v488_v26 = vmax.f32 %v424_v18, 0.0  ;;  %v166_v28 = vmul.f32 %v653_v20, %v1005_v1  ;;  %v426_v30 = vadd.f32 %v776_v5, %v234_v22  ;;  %v236_v32 = vadd.f32 %v1019_v7, %v165_v24 }
  0x15   :  { %v427_v31 = vadd.f32 %v777_v11, %v235_v23  ;;  %v784_v33 = vunpack.c.l.bf16 %v919_v21  ;;  %v489_v35 = vmax.f32 %v425_v27, 0.0  ;;  %v167_v37 = vmul.f32 %v656_v29, %v1005_v1 }
  0x16   :  { %552 = vst [vmem:[#allocation2 + $0x40] sm:$0xff] %v488_v26  ;;  %v237_v36 = vadd.f32 %v1019_v7, %v166_v28  ;;  %v657_v38 = vunpack.c.h.bf16 %v888_v16  ;;  %v490_v40 = vmax.f32 %v426_v30, 0.0  ;;  %v428_v42 = vadd.f32 %v780_v15, %v236_v32 }
  0x17   :  { %v491_v41 = vmax.f32 %v427_v31, 0.0  ;;  %v785_v43 = vunpack.c.h.bf16 %v919_v21 }
  0x18   :  { %9 = vsyncpa [#allocation3], 0  ;;  %553 = vst [vmem:[#allocation2 + $0x48] sm:$0xff] %v489_v35  ;;  %v429_v44 = vadd.f32 %v781_v25, %v237_v36  ;;  %v238_v45 = vadd.f32 %v1019_v7, %v167_v37  ;;  %v168_v46 = vmul.f32 %v657_v38, %v1005_v1  ;;  %v660_v47 = vunpack.c.l.bf16 %v889_v34  ;;  %v890_v48 = vld [vmem:[%s1341_s0 + $0x48] sm:$0xff]   ;;  %v891_v58 = vld [vmem:[%s1341_s0 + $0x50] sm:$0xff]  }
  0x19   :  { %v921_v49 = vld [vmem:[%s1344_s3 + $0x48] sm:$0xff]   ;;  %554 = vst [vmem:[#allocation2 + $0x50] sm:$0xff] %v490_v40  ;;  %555 = vst [vmem:[#allocation2 + $0x58] sm:$0xff] %v491_v41  ;;  %v492_v50 = vmax.f32 %v428_v42, 0.0  ;;  %v788_v51 = vunpack.c.l.bf16 %v920_v39  ;;  %v661_v52 = vunpack.c.h.bf16 %v889_v34  ;;  %v789_v53 = vunpack.c.h.bf16 %v920_v39  ;;  %v922_v63 = vld [vmem:[%s1344_s3 + $0x50] sm:$0xff]  }
  0x1a   :  { %v493_v54 = vmax.f32 %v429_v44, 0.0  ;;  %v430_v55 = vadd.f32 %v784_v33, %v238_v45  ;;  %v239_v56 = vadd.f32 %v1019_v7, %v168_v46  ;;  %v169_v57 = vmul.f32 %v660_v47, %v1005_v1  ;;  %v892_v10 = vld [vmem:[%s1341_s0 + $0x58] sm:$0xff]   ;;  %v893_v28 = vld [vmem:[%s1341_s0 + $0x60] sm:$0xff]   ;;  %v894_v42 = vld [vmem:[%s1341_s0 + $0x68] sm:$0xff]  }
  0x1b   :  { %556 = vst [vmem:[#allocation2 + $0x60] sm:$0xff] %v492_v50  ;;  %v170_v59 = vmul.f32 %v661_v52, %v1005_v1  ;;  %v664_v60 = vunpack.c.l.bf16 %v890_v48  ;;  %v792_v61 = vunpack.c.l.bf16 %v921_v49  ;;  %v665_v62 = vunpack.c.h.bf16 %v890_v48  ;;  %v923_v19 = vld [vmem:[%s1344_s3 + $0x58] sm:$0xff]   ;;  %v924_v33 = vld [vmem:[%s1344_s3 + $0x60] sm:$0xff]   ;;  %v895_v52 = vld [vmem:[%s1341_s0 + $0x70] sm:$0xff]  }
  0x1c   :  { %557 = vst [vmem:[#allocation2 + $0x68] sm:$0xff] %v493_v54  ;;  %v494_v0 = vmax.f32 %v430_v55, 0.0  ;;  %v431_v2 = vadd.f32 %v785_v43, %v239_v56  ;;  %v240_v3 = vadd.f32 %v1019_v7, %v169_v57  ;;  %v793_v4 = vunpack.c.h.bf16 %v921_v49  ;;  %v925_v43 = vld [vmem:[%s1344_s3 + $0x68] sm:$0xff]   ;;  %v926_v57 = vld [vmem:[%s1344_s3 + $0x70] sm:$0xff]  }
  0x1d   :  { %v241_v5 = vadd.f32 %v1019_v7, %v170_v59  ;;  %v171_v6 = vmul.f32 %v664_v60, %v1005_v1  ;;  %v172_v8 = vmul.f32 %v665_v62, %v1005_v1  ;;  %v668_v9 = vunpack.c.l.bf16 %v891_v58 }
  0x1e   :  { %558 = vst [vmem:[#allocation2 + $0x70] sm:$0xff] %v494_v0  ;;  %v495_v11 = vmax.f32 %v431_v2, 0.0  ;;  %v432_v12 = vadd.f32 %v788_v51, %v240_v3  ;;  %v796_v13 = vunpack.c.l.bf16 %v922_v63  ;;  %v669_v14 = vunpack.c.h.bf16 %v891_v58  ;;  %v896_v3 = vld [vmem:[%s1341_s0 + $0x78] sm:$0xff]  }
  0x1f   :  { %v433_v15 = vadd.f32 %v789_v53, %v241_v5  ;;  %v242_v16 = vadd.f32 %v1019_v7, %v171_v6  ;;  %v243_v17 = vadd.f32 %v1019_v7, %v172_v8  ;;  %v173_v18 = vmul.f32 %v668_v9, %v1005_v1 }
  0x20   :  { %559 = vst [vmem:[#allocation2 + $0x78] sm:$0xff] %v495_v11  ;;  %v496_v20 = vmax.f32 %v432_v12, 0.0  ;;  %v174_v21 = vmul.f32 %v669_v14, %v1005_v1  ;;  %v797_v22 = vunpack.c.h.bf16 %v922_v63  ;;  %v672_v23 = vunpack.c.l.bf16 %v892_v10 }
  0x21   :  { %v497_v24 = vmax.f32 %v433_v15, 0.0  ;;  %v434_v25 = vadd.f32 %v792_v61, %v242_v16  ;;  %v435_v26 = vadd.f32 %v793_v4, %v243_v17  ;;  %v244_v27 = vadd.f32 %v1019_v7, %v173_v18 }
  0x22   :  { %560 = vst [vmem:[#allocation2 + $0x80] sm:$0xff] %v496_v20  ;;  %v245_v29 = vadd.f32 %v1019_v7, %v174_v21  ;;  %v175_v30 = vmul.f32 %v672_v23, %v1005_v1  ;;  %v800_v31 = vunpack.c.l.bf16 %v923_v19  ;;  %v673_v32 = vunpack.c.h.bf16 %v892_v10 }
  0x23   :  { %561 = vst [vmem:[#allocation2 + $0x88] sm:$0xff] %v497_v24  ;;  %v498_v34 = vmax.f32 %v434_v25, 0.0  ;;  %v499_v35 = vmax.f32 %v435_v26, 0.0  ;;  %v436_v36 = vadd.f32 %v796_v13, %v244_v27  ;;  %v801_v37 = vunpack.c.h.bf16 %v923_v19  ;;  %v927_v13 = vld [vmem:[%s1344_s3 + $0x78] sm:$0xff]   ;;  %v928_v27 = vld [vmem:[%s1344_s3 + $0x80] sm:$0xff]  }
  0x24   :  { %v437_v38 = vadd.f32 %v797_v22, %v245_v29  ;;  %v246_v39 = vadd.f32 %v1019_v7, %v175_v30  ;;  %v176_v40 = vmul.f32 %v673_v32, %v1005_v1  ;;  %v676_v41 = vunpack.c.l.bf16 %v893_v28  ;;  %v897_v22 = vld [vmem:[%s1341_s0 + $0x80] sm:$0xff]  }
  0x25   :  { %562 = vst [vmem:[#allocation2 + $0x90] sm:$0xff] %v498_v34  ;;  %563 = vst [vmem:[#allocation2 + $0x98] sm:$0xff] %v499_v35  ;;  %v500_v44 = vmax.f32 %v436_v36, 0.0  ;;  %v804_v45 = vunpack.c.l.bf16 %v924_v33  ;;  %v677_v46 = vunpack.c.h.bf16 %v893_v28  ;;  %v805_v47 = vunpack.c.h.bf16 %v924_v33  ;;  %v898_v36 = vld [vmem:[%s1341_s0 + $0x88] sm:$0xff]  }
  0x26   :  { %v501_v48 = vmax.f32 %v437_v38, 0.0  ;;  %v438_v49 = vadd.f32 %v800_v31, %v246_v39  ;;  %v247_v50 = vadd.f32 %v1019_v7, %v176_v40  ;;  %v177_v51 = vmul.f32 %v676_v41, %v1005_v1 }
  0x27   :  { %564 = vst [vmem:[#allocation2 + $0xa0] sm:$0xff] %v500_v44  ;;  %v178_v53 = vmul.f32 %v677_v46, %v1005_v1  ;;  %v680_v54 = vunpack.c.l.bf16 %v894_v42  ;;  %v808_v55 = vunpack.c.l.bf16 %v925_v43  ;;  %v681_v56 = vunpack.c.h.bf16 %v894_v42  ;;  %v899_v46 = vld [vmem:[%s1341_s0 + $0x90] sm:$0xff]  }
  0x28   :  { %565 = vst [vmem:[#allocation2 + $0xa8] sm:$0xff] %v501_v48  ;;  %v502_v58 = vmax.f32 %v438_v49, 0.0  ;;  %v439_v59 = vadd.f32 %v801_v37, %v247_v50  ;;  %v248_v60 = vadd.f32 %v1019_v7, %v177_v51  ;;  %v809_v61 = vunpack.c.h.bf16 %v925_v43  ;;  %v929_v37 = vld [vmem:[%s1344_s3 + $0x88] sm:$0xff]   ;;  %v930_v51 = vld [vmem:[%s1344_s3 + $0x90] sm:$0xff]  }
  0x29   :  { %v249_v62 = vadd.f32 %v1019_v7, %v178_v53  ;;  %v179_v63 = vmul.f32 %v680_v54, %v1005_v1  ;;  %v180_v0 = vmul.f32 %v681_v56, %v1005_v1  ;;  %v684_v2 = vunpack.c.l.bf16 %v895_v52 }
  0x2a   :  { %566 = vst [vmem:[#allocation2 + $0xb0] sm:$0xff] %v502_v58  ;;  %v503_v4 = vmax.f32 %v439_v59, 0.0  ;;  %v440_v5 = vadd.f32 %v804_v45, %v248_v60  ;;  %v812_v6 = vunpack.c.l.bf16 %v926_v57  ;;  %v685_v8 = vunpack.c.h.bf16 %v895_v52  ;;  %v900_v60 = vld [vmem:[%s1341_s0 + $0x98] sm:$0xff]  }
  0x2b   :  { %v441_v9 = vadd.f32 %v805_v47, %v249_v62  ;;  %v250_v10 = vadd.f32 %v1019_v7, %v179_v63  ;;  %v251_v11 = vadd.f32 %v1019_v7, %v180_v0  ;;  %v181_v12 = vmul.f32 %v684_v2, %v1005_v1 }
  0x2c   :  { %567 = vst [vmem:[#allocation2 + $0xb8] sm:$0xff] %v503_v4  ;;  %v504_v14 = vmax.f32 %v440_v5, 0.0  ;;  %v182_v15 = vmul.f32 %v685_v8, %v1005_v1  ;;  %v813_v16 = vunpack.c.h.bf16 %v926_v57  ;;  %v688_v17 = vunpack.c.l.bf16 %v896_v3 }
  0x2d   :  { %v505_v18 = vmax.f32 %v441_v9, 0.0  ;;  %v442_v19 = vadd.f32 %v808_v55, %v250_v10  ;;  %v443_v20 = vadd.f32 %v809_v61, %v251_v11  ;;  %v252_v21 = vadd.f32 %v1019_v7, %v181_v12 }
  0x2e   :  { %568 = vst [vmem:[#allocation2 + $0xc0] sm:$0xff] %v504_v14  ;;  %v253_v23 = vadd.f32 %v1019_v7, %v182_v15  ;;  %v183_v24 = vmul.f32 %v688_v17, %v1005_v1  ;;  %v816_v25 = vunpack.c.l.bf16 %v927_v13  ;;  %v689_v26 = vunpack.c.h.bf16 %v896_v3 }
  0x2f   :  { %569 = vst [vmem:[#allocation2 + $0xc8] sm:$0xff] %v505_v18  ;;  %v506_v28 = vmax.f32 %v442_v19, 0.0  ;;  %v507_v29 = vmax.f32 %v443_v20, 0.0  ;;  %v444_v30 = vadd.f32 %v812_v6, %v252_v21  ;;  %v817_v31 = vunpack.c.h.bf16 %v927_v13  ;;  %v931_v6 = vld [vmem:[%s1344_s3 + $0x98] sm:$0xff]   ;;  %v932_v21 = vld [vmem:[%s1344_s3 + $0xa0] sm:$0xff]  }
  0x30   :  { %v445_v32 = vadd.f32 %v813_v16, %v253_v23  ;;  %v254_v33 = vadd.f32 %v1019_v7, %v183_v24  ;;  %v184_v34 = vmul.f32 %v689_v26, %v1005_v1  ;;  %v692_v35 = vunpack.c.l.bf16 %v897_v22  ;;  %v901_v16 = vld [vmem:[%s1341_s0 + $0xa0] sm:$0xff]  }
  0x31   :  { %570 = vst [vmem:[#allocation2 + $0xd0] sm:$0xff] %v506_v28  ;;  %571 = vst [vmem:[#allocation2 + $0xd8] sm:$0xff] %v507_v29  ;;  %v508_v38 = vmax.f32 %v444_v30, 0.0  ;;  %v820_v39 = vunpack.c.l.bf16 %v928_v27  ;;  %v693_v40 = vunpack.c.h.bf16 %v897_v22  ;;  %v821_v41 = vunpack.c.h.bf16 %v928_v27  ;;  %v902_v30 = vld [vmem:[%s1341_s0 + $0xa8] sm:$0xff]  }
  0x32   :  { %v509_v42 = vmax.f32 %v445_v32, 0.0  ;;  %v446_v43 = vadd.f32 %v816_v25, %v254_v33  ;;  %v255_v44 = vadd.f32 %v1019_v7, %v184_v34  ;;  %v185_v45 = vmul.f32 %v692_v35, %v1005_v1 }
  0x33   :  { %572 = vst [vmem:[#allocation2 + $0xe0] sm:$0xff] %v508_v38  ;;  %v186_v47 = vmul.f32 %v693_v40, %v1005_v1  ;;  %v696_v48 = vunpack.c.l.bf16 %v898_v36  ;;  %v824_v49 = vunpack.c.l.bf16 %v929_v37  ;;  %v697_v50 = vunpack.c.h.bf16 %v898_v36  ;;  %v903_v40 = vld [vmem:[%s1341_s0 + $0xb0] sm:$0xff]  }
  0x34   :  { %573 = vst [vmem:[#allocation2 + $0xe8] sm:$0xff] %v509_v42  ;;  %v510_v52 = vmax.f32 %v446_v43, 0.0  ;;  %v447_v53 = vadd.f32 %v817_v31, %v255_v44  ;;  %v256_v54 = vadd.f32 %v1019_v7, %v185_v45  ;;  %v825_v55 = vunpack.c.h.bf16 %v929_v37  ;;  %v933_v31 = vld [vmem:[%s1344_s3 + $0xa8] sm:$0xff]   ;;  %v934_v45 = vld [vmem:[%s1344_s3 + $0xb0] sm:$0xff]  }
  0x35   :  { %v257_v56 = vadd.f32 %v1019_v7, %v186_v47  ;;  %v187_v57 = vmul.f32 %v696_v48, %v1005_v1  ;;  %v188_v58 = vmul.f32 %v697_v50, %v1005_v1  ;;  %v700_v59 = vunpack.c.l.bf16 %v899_v46 }
  0x36   :  { %574 = vst [vmem:[#allocation2 + $0xf0] sm:$0xff] %v510_v52  ;;  %v511_v61 = vmax.f32 %v447_v53, 0.0  ;;  %v448_v62 = vadd.f32 %v820_v39, %v256_v54  ;;  %v828_v63 = vunpack.c.l.bf16 %v930_v51  ;;  %v701_v0 = vunpack.c.h.bf16 %v899_v46  ;;  %v904_v54 = vld [vmem:[%s1341_s0 + $0xb8] sm:$0xff]  }
  0x37   :  { %v449_v2 = vadd.f32 %v821_v41, %v257_v56  ;;  %v258_v3 = vadd.f32 %v1019_v7, %v187_v57  ;;  %v259_v4 = vadd.f32 %v1019_v7, %v188_v58  ;;  %v189_v5 = vmul.f32 %v700_v59, %v1005_v1 }
  0x38   :  { %575 = vst [vmem:[#allocation2 + $0xf8] sm:$0xff] %v511_v61  ;;  %v512_v8 = vmax.f32 %v448_v62, 0.0  ;;  %v190_v9 = vmul.f32 %v701_v0, %v1005_v1  ;;  %v829_v10 = vunpack.c.h.bf16 %v930_v51  ;;  %v704_v11 = vunpack.c.l.bf16 %v900_v60 }
  0x39   :  { %v513_v12 = vmax.f32 %v449_v2, 0.0  ;;  %v450_v13 = vadd.f32 %v824_v49, %v258_v3  ;;  %v451_v14 = vadd.f32 %v825_v55, %v259_v4  ;;  %v260_v15 = vadd.f32 %v1019_v7, %v189_v5 }
  0x3a   :  { %576 = vst [vmem:[#allocation2 + $0x100] sm:$0xff] %v512_v8  ;;  %v261_v17 = vadd.f32 %v1019_v7, %v190_v9  ;;  %v191_v18 = vmul.f32 %v704_v11, %v1005_v1  ;;  %v832_v19 = vunpack.c.l.bf16 %v931_v6  ;;  %v705_v20 = vunpack.c.h.bf16 %v900_v60 }
  0x3b   :  { %577 = vst [vmem:[#allocation2 + $0x108] sm:$0xff] %v513_v12  ;;  %v514_v22 = vmax.f32 %v450_v13, 0.0  ;;  %v515_v23 = vmax.f32 %v451_v14, 0.0  ;;  %v452_v24 = vadd.f32 %v828_v63, %v260_v15  ;;  %v833_v25 = vunpack.c.h.bf16 %v931_v6  ;;  %v935_v63 = vld [vmem:[%s1344_s3 + $0xb8] sm:$0xff]   ;;  %v936_v15 = vld [vmem:[%s1344_s3 + $0xc0] sm:$0xff]  }
  0x3c   :  { %v453_v26 = vadd.f32 %v829_v10, %v261_v17  ;;  %v262_v27 = vadd.f32 %v1019_v7, %v191_v18  ;;  %v192_v28 = vmul.f32 %v705_v20, %v1005_v1  ;;  %v708_v29 = vunpack.c.l.bf16 %v901_v16  ;;  %v905_v10 = vld [vmem:[%s1341_s0 + $0xc0] sm:$0xff]  }
  0x3d   :  { %578 = vst [vmem:[#allocation2 + $0x110] sm:$0xff] %v514_v22  ;;  %579 = vst [vmem:[#allocation2 + $0x118] sm:$0xff] %v515_v23  ;;  %v516_v32 = vmax.f32 %v452_v24, 0.0  ;;  %v836_v33 = vunpack.c.l.bf16 %v932_v21  ;;  %v709_v34 = vunpack.c.h.bf16 %v901_v16  ;;  %v837_v35 = vunpack.c.h.bf16 %v932_v21  ;;  %v906_v24 = vld [vmem:[%s1341_s0 + $0xc8] sm:$0xff]  }
  0x3e   :  { %v517_v36 = vmax.f32 %v453_v26, 0.0  ;;  %v454_v37 = vadd.f32 %v832_v19, %v262_v27  ;;  %v263_v38 = vadd.f32 %v1019_v7, %v192_v28  ;;  %v193_v39 = vmul.f32 %v708_v29, %v1005_v1 }
  0x3f   :  { %580 = vst [vmem:[#allocation2 + $0x120] sm:$0xff] %v516_v32  ;;  %v194_v41 = vmul.f32 %v709_v34, %v1005_v1  ;;  %v712_v42 = vunpack.c.l.bf16 %v902_v30  ;;  %v840_v43 = vunpack.c.l.bf16 %v933_v31  ;;  %v713_v44 = vunpack.c.h.bf16 %v902_v30  ;;  %v907_v34 = vld [vmem:[%s1341_s0 + $0xd0] sm:$0xff]  }
  0x40   :  { %581 = vst [vmem:[#allocation2 + $0x128] sm:$0xff] %v517_v36  ;;  %v518_v46 = vmax.f32 %v454_v37, 0.0  ;;  %v455_v47 = vadd.f32 %v833_v25, %v263_v38  ;;  %v264_v48 = vadd.f32 %v1019_v7, %v193_v39  ;;  %v841_v49 = vunpack.c.h.bf16 %v933_v31  ;;  %v937_v25 = vld [vmem:[%s1344_s3 + $0xc8] sm:$0xff]   ;;  %v938_v39 = vld [vmem:[%s1344_s3 + $0xd0] sm:$0xff]  }
  0x41   :  { %v265_v50 = vadd.f32 %v1019_v7, %v194_v41  ;;  %v195_v51 = vmul.f32 %v712_v42, %v1005_v1  ;;  %v196_v52 = vmul.f32 %v713_v44, %v1005_v1  ;;  %v716_v53 = vunpack.c.l.bf16 %v903_v40 }
  0x42   :  { %582 = vst [vmem:[#allocation2 + $0x130] sm:$0xff] %v518_v46  ;;  %v519_v55 = vmax.f32 %v455_v47, 0.0  ;;  %v456_v56 = vadd.f32 %v836_v33, %v264_v48  ;;  %v844_v57 = vunpack.c.l.bf16 %v934_v45  ;;  %v717_v58 = vunpack.c.h.bf16 %v903_v40  ;;  %v908_v48 = vld [vmem:[%s1341_s0 + $0xd8] sm:$0xff]  }
  0x43   :  { %v457_v59 = vadd.f32 %v837_v35, %v265_v50  ;;  %v266_v60 = vadd.f32 %v1019_v7, %v195_v51  ;;  %v267_v61 = vadd.f32 %v1019_v7, %v196_v52  ;;  %v197_v62 = vmul.f32 %v716_v53, %v1005_v1 }
  0x44   :  { %583 = vst [vmem:[#allocation2 + $0x138] sm:$0xff] %v519_v55  ;;  %v520_v0 = vmax.f32 %v456_v56, 0.0  ;;  %v198_v2 = vmul.f32 %v717_v58, %v1005_v1  ;;  %v845_v3 = vunpack.c.h.bf16 %v934_v45  ;;  %v720_v4 = vunpack.c.l.bf16 %v904_v54 }
  0x45   :  { %v521_v5 = vmax.f32 %v457_v59, 0.0  ;;  %v458_v6 = vadd.f32 %v840_v43, %v266_v60  ;;  %v459_v8 = vadd.f32 %v841_v49, %v267_v61  ;;  %v268_v9 = vadd.f32 %v1019_v7, %v197_v62 }
  0x46   :  { %584 = vst [vmem:[#allocation2 + $0x140] sm:$0xff] %v520_v0  ;;  %v269_v11 = vadd.f32 %v1019_v7, %v198_v2  ;;  %v199_v12 = vmul.f32 %v720_v4, %v1005_v1  ;;  %v848_v13 = vunpack.c.l.bf16 %v935_v63  ;;  %v721_v14 = vunpack.c.h.bf16 %v904_v54 }
  0x47   :  { %585 = vst [vmem:[#allocation2 + $0x148] sm:$0xff] %v521_v5  ;;  %v522_v16 = vmax.f32 %v458_v6, 0.0  ;;  %v523_v17 = vmax.f32 %v459_v8, 0.0  ;;  %v460_v18 = vadd.f32 %v844_v57, %v268_v9  ;;  %v849_v19 = vunpack.c.h.bf16 %v935_v63  ;;  %v939_v57 = vld [vmem:[%s1344_s3 + $0xd8] sm:$0xff]   ;;  %v940_v9 = vld [vmem:[%s1344_s3 + $0xe0] sm:$0xff]  }
  0x48   :  { %v461_v20 = vadd.f32 %v845_v3, %v269_v11  ;;  %v270_v21 = vadd.f32 %v1019_v7, %v199_v12  ;;  %v200_v22 = vmul.f32 %v721_v14, %v1005_v1  ;;  %v724_v23 = vunpack.c.l.bf16 %v905_v10  ;;  %v909_v3 = vld [vmem:[%s1341_s0 + $0xe0] sm:$0xff]  }
  0x49   :  { %586 = vst [vmem:[#allocation2 + $0x150] sm:$0xff] %v522_v16  ;;  %587 = vst [vmem:[#allocation2 + $0x158] sm:$0xff] %v523_v17  ;;  %v524_v26 = vmax.f32 %v460_v18, 0.0  ;;  %v852_v27 = vunpack.c.l.bf16 %v936_v15  ;;  %v725_v28 = vunpack.c.h.bf16 %v905_v10  ;;  %v853_v29 = vunpack.c.h.bf16 %v936_v15  ;;  %v910_v18 = vld [vmem:[%s1341_s0 + $0xe8] sm:$0xff]  }
  0x4a   :  { %v525_v30 = vmax.f32 %v461_v20, 0.0  ;;  %v462_v31 = vadd.f32 %v848_v13, %v270_v21  ;;  %v271_v32 = vadd.f32 %v1019_v7, %v200_v22  ;;  %v201_v33 = vmul.f32 %v724_v23, %v1005_v1 }
  0x4b   :  { %588 = vst [vmem:[#allocation2 + $0x160] sm:$0xff] %v524_v26  ;;  %v202_v35 = vmul.f32 %v725_v28, %v1005_v1  ;;  %v728_v36 = vunpack.c.l.bf16 %v906_v24  ;;  %v856_v37 = vunpack.c.l.bf16 %v937_v25  ;;  %v729_v38 = vunpack.c.h.bf16 %v906_v24  ;;  %v911_v28 = vld [vmem:[%s1341_s0 + $0xf0] sm:$0xff]  }
  0x4c   :  { %589 = vst [vmem:[#allocation2 + $0x168] sm:$0xff] %v525_v30  ;;  %v526_v40 = vmax.f32 %v462_v31, 0.0  ;;  %v463_v41 = vadd.f32 %v849_v19, %v271_v32  ;;  %v272_v42 = vadd.f32 %v1019_v7, %v201_v33  ;;  %v857_v43 = vunpack.c.h.bf16 %v937_v25  ;;  %v941_v19 = vld [vmem:[%s1344_s3 + $0xe8] sm:$0xff]   ;;  %v942_v33 = vld [vmem:[%s1344_s3 + $0xf0] sm:$0xff]  }
  0x4d   :  { %v273_v44 = vadd.f32 %v1019_v7, %v202_v35  ;;  %v203_v45 = vmul.f32 %v728_v36, %v1005_v1  ;;  %v204_v46 = vmul.f32 %v729_v38, %v1005_v1  ;;  %v732_v47 = vunpack.c.l.bf16 %v907_v34 }
  0x4e   :  { %590 = vst [vmem:[#allocation2 + $0x170] sm:$0xff] %v526_v40  ;;  %v527_v49 = vmax.f32 %v463_v41, 0.0  ;;  %v464_v50 = vadd.f32 %v852_v27, %v272_v42  ;;  %v860_v51 = vunpack.c.l.bf16 %v938_v39  ;;  %v733_v52 = vunpack.c.h.bf16 %v907_v34  ;;  %v912_v42 = vld [vmem:[%s1341_s0 + $0xf8] sm:$0xff]   ;;  %s971_s0 = smov [#allocation2]  }
  0x4f   :  { %v465_v53 = vadd.f32 %v853_v29, %v273_v44  ;;  %v274_v54 = vadd.f32 %v1019_v7, %v203_v45  ;;  %v275_v55 = vadd.f32 %v1019_v7, %v204_v46  ;;  %v205_v56 = vmul.f32 %v732_v47, %v1005_v1 }
  0x50   :  { %591 = vst [vmem:[#allocation2 + $0x178] sm:$0xff] %v527_v49  ;;  %v528_v58 = vmax.f32 %v464_v50, 0.0  ;;  %v206_v59 = vmul.f32 %v733_v52, %v1005_v1  ;;  %v861_v60 = vunpack.c.h.bf16 %v938_v39  ;;  %v736_v61 = vunpack.c.l.bf16 %v908_v48 }
  0x51   :  { %v529_v62 = vmax.f32 %v465_v53, 0.0  ;;  %v466_v63 = vadd.f32 %v856_v37, %v274_v54  ;;  %v467_v0 = vadd.f32 %v857_v43, %v275_v55  ;;  %v276_v2 = vadd.f32 %v1019_v7, %v205_v56 }
  0x52   :  { %592 = vst [vmem:[#allocation2 + $0x180] sm:$0xff] %v528_v58  ;;  %v277_v4 = vadd.f32 %v1019_v7, %v206_v59  ;;  %v207_v5 = vmul.f32 %v736_v61, %v1005_v1  ;;  %v864_v6 = vunpack.c.l.bf16 %v939_v57  ;;  %v737_v8 = vunpack.c.h.bf16 %v908_v48 }
  0x53   :  { %593 = vst [vmem:[#allocation2 + $0x188] sm:$0xff] %v529_v62  ;;  %v530_v10 = vmax.f32 %v466_v63, 0.0  ;;  %v531_v11 = vmax.f32 %v467_v0, 0.0  ;;  %v468_v12 = vadd.f32 %v860_v51, %v276_v2  ;;  %v865_v13 = vunpack.c.h.bf16 %v939_v57  ;;  %v943_v51 = vld [vmem:[%s1344_s3 + $0xf8] sm:$0xff]   ;;  %s613_s3 = sshll.u32 %s971_s0, 4  ;;  %s614_s3 = int_to_ptr.vmem [resolvable:$true] %s613_s3 }
  0x54   :  { %v469_v14 = vadd.f32 %v861_v60, %v277_v4  ;;  %v278_v15 = vadd.f32 %v1019_v7, %v207_v5  ;;  %v208_v16 = vmul.f32 %v737_v8, %v1005_v1  ;;  %v740_v17 = vunpack.c.l.bf16 %v909_v3  ;;  %s947_s7 = scalar_lea.vmem %s614_s3, 8192  ;;  %p952_p1 = scmp.lt.s32.totalorder %s614_s3, %s614_s3 }
  0x55   :  { %594 = vst [vmem:[#allocation2 + $0x190] sm:$0xff] %v530_v10  ;;  %595 = vst [vmem:[#allocation2 + $0x198] sm:$0xff] %v531_v11  ;;  %v532_v20 = vmax.f32 %v468_v12, 0.0  ;;  %v868_v21 = vunpack.c.l.bf16 %v940_v9  ;;  %v741_v22 = vunpack.c.h.bf16 %v909_v3  ;;  %v869_v23 = vunpack.c.h.bf16 %v940_v9  ;;  %p948_p0 = scmp.ne.s32.totalorder %s614_s3, %s947_s7  ;;  %p953_p2 = scmp.lt.s32.totalorder %s947_s7, %s947_s7 }
  0x56   :  { %v533_v24 = vmax.f32 %v469_v14, 0.0  ;;  %v470_v25 = vadd.f32 %v864_v6, %v278_v15  ;;  %v279_v26 = vadd.f32 %v1019_v7, %v208_v16  ;;  %v209_v27 = vmul.f32 %v740_v17, %v1005_v1 }
  0x57   :  { %596 = vst [vmem:[#allocation2 + $0x1a0] sm:$0xff] %v532_v20  ;;  %v210_v29 = vmul.f32 %v741_v22, %v1005_v1  ;;  %v744_v30 = vunpack.c.l.bf16 %v910_v18  ;;  %v872_v31 = vunpack.c.l.bf16 %v941_v19  ;;  %v745_v32 = vunpack.c.h.bf16 %v910_v18  ;;  %p954_p3 = por %p953_p2, %p952_p1 }
  0x58   :  { %597 = vst [vmem:[#allocation2 + $0x1a8] sm:$0xff] %v533_v24  ;;  %v534_v34 = vmax.f32 %v470_v25, 0.0  ;;  %v471_v35 = vadd.f32 %v865_v13, %v279_v26  ;;  %v280_v36 = vadd.f32 %v1019_v7, %v209_v27  ;;  %v873_v37 = vunpack.c.h.bf16 %v941_v19 }
  0x59   :  { %v281_v38 = vadd.f32 %v1019_v7, %v210_v29  ;;  %v211_v39 = vmul.f32 %v744_v30, %v1005_v1  ;;  %v212_v40 = vmul.f32 %v745_v32, %v1005_v1  ;;  %v748_v41 = vunpack.c.l.bf16 %v911_v28  ;;  %p955_p4 = pnand %p954_p3, %p948_p0 }
  0x5a   :  { %598 = vst [vmem:[#allocation2 + $0x1b0] sm:$0xff] %v534_v34  ;;  %v535_v43 = vmax.f32 %v471_v35, 0.0  ;;  %v472_v44 = vadd.f32 %v868_v21, %v280_v36  ;;  %v876_v45 = vunpack.c.l.bf16 %v942_v33  ;;  %v749_v46 = vunpack.c.h.bf16 %v911_v28 }
  0x5b   :  { %v473_v47 = vadd.f32 %v869_v23, %v281_v38  ;;  %v282_v48 = vadd.f32 %v1019_v7, %v211_v39  ;;  %v283_v49 = vadd.f32 %v1019_v7, %v212_v40  ;;  %v213_v50 = vmul.f32 %v748_v41, %v1005_v1 }
  0x5c   :  { %599 = vst [vmem:[#allocation2 + $0x1b8] sm:$0xff] %v535_v43  ;;  %v536_v52 = vmax.f32 %v472_v44, 0.0  ;;  %v214_v53 = vmul.f32 %v749_v46, %v1005_v1  ;;  %v877_v54 = vunpack.c.h.bf16 %v942_v33  ;;  %v752_v55 = vunpack.c.l.bf16 %v912_v42 }
  0x5d   :  { %v537_v56 = vmax.f32 %v473_v47, 0.0  ;;  %v474_v57 = vadd.f32 %v872_v31, %v282_v48  ;;  %v475_v58 = vadd.f32 %v873_v37, %v283_v49  ;;  %v284_v59 = vadd.f32 %v1019_v7, %v213_v50 }
  0x5e   :  { %600 = vst [vmem:[#allocation2 + $0x1c0] sm:$0xff] %v536_v52  ;;  %v285_v60 = vadd.f32 %v1019_v7, %v214_v53  ;;  %v215_v61 = vmul.f32 %v752_v55, %v1005_v1  ;;  %v880_v62 = vunpack.c.l.bf16 %v943_v51  ;;  %v753_v63 = vunpack.c.h.bf16 %v912_v42 }
  0x5f   :  { %601 = vst [vmem:[#allocation2 + $0x1c8] sm:$0xff] %v537_v56  ;;  %v538_v0 = vmax.f32 %v474_v57, 0.0  ;;  %v539_v2 = vmax.f32 %v475_v58, 0.0  ;;  %v476_v3 = vadd.f32 %v876_v45, %v284_v59  ;;  %v881_v8 = vunpack.c.h.bf16 %v943_v51 }
  0x60   :  { %v477_v4 = vadd.f32 %v877_v54, %v285_v60  ;;  %v286_v5 = vadd.f32 %v1019_v7, %v215_v61  ;;  %v216_v6 = vmul.f32 %v753_v63, %v1005_v1 }
  0x61   :  { %602 = vst [vmem:[#allocation2 + $0x1d0] sm:$0xff] %v538_v0  ;;  %603 = vst [vmem:[#allocation2 + $0x1d8] sm:$0xff] %v539_v2  ;;  %v540_v9 = vmax.f32 %v476_v3, 0.0 }
  0x62   :  { %v541_v10 = vmax.f32 %v477_v4, 0.0  ;;  %v478_v11 = vadd.f32 %v880_v62, %v286_v5  ;;  %v287_v12 = vadd.f32 %v1019_v7, %v216_v6 }
  0x63   :  { %604 = vst [vmem:[#allocation2 + $0x1e0] sm:$0xff] %v540_v9 }
  0x64   :  { %605 = vst [vmem:[#allocation2 + $0x1e8] sm:$0xff] %v541_v10  ;;  %v542_v13 = vmax.f32 %v478_v11, 0.0  ;;  %v479_v14 = vadd.f32 %v881_v8, %v287_v12 }
  0x66   :  { %606 = vst [vmem:[#allocation2 + $0x1f0] sm:$0xff] %v542_v13  ;;  %v543_v15 = vmax.f32 %v479_v14, 0.0 }
  0x68   :  { %607 = vst [vmem:[#allocation2 + $0x1f8] sm:$0xff] %v543_v15 }
  0x69   :  { %958 = shalt.err (!%p955_p4)
}
  0x6a   :  { %s959_s10 = scalar_lea.hbm %s1345_s4, 8192 }
  0x6b   :  { %p960_p5 = scmp.ne.s32.totalorder %s1345_s4, %s959_s10  ;;  %p963_p6 = scmp.lt.u32.totalorder %s959_s10, %s1345_s4 }
  0x6d   :  { %p965_p7 = pnand %p963_p6, %p960_p5 }
  0x6f   :  { %968 = shalt.err (!%p965_p7)
}
  0x70   :  { %s972_s15 = smov 128   ;;  %s973_s16 = smov 8  }
  0x71   :  { %619 = dma.vmem_to_hbm [thread:$0]  %s614_s3, 8192, %s1345_s4, [#allocation3], %s972_s15, %s972_s15, %s973_s16  }
  0x72   :  { %969 = dma.done.wait [#allocation3], 8192  }
  0x73   :  { %970 = vsyncadd [#allocation3], 4294959104 }
  0x74   :  { %623 = vsyncpa [#allocation3], 1 }

</bundles_post_ra>
